<compile_context>
chip_gen: v6e
topology: v6e:2x2x1
jax: 0.10.0
libtpu: 0.0.40
codegen_flags: <defaults>
</compile_context>

<pallas_src>
import jax
import jax.numpy as jnp
from jax.experimental import pallas as pl
from jax.experimental.pallas import tpu as pltpu

INPUT_DIM = 72
EMBED_DIM = 12
NUM_HEADS = 2
HEAD_DIM = EMBED_DIM // NUM_HEADS
FFN_DIM = 2048            # nn.TransformerEncoder/DecoderLayer default dim_feedforward
LN_EPS = 1e-5             # default layer_norm_eps
FFN_WEIGHTS_BF16 = True   # set False for bit-faithful f32 FFN weights


# ----------------------------- host-side packing ------------------------------

def _as2d(a):
    a = jnp.asarray(a, jnp.float32)
    return a.reshape(1, -1) if a.ndim == 1 else a


def pack_slab(named):
    """Pack small 2-D params (cols <= 128) into one (rows, 128) f32 slab.

    Multi-row entries start at 8-sublane-aligned rows; 1-row vectors are packed
    densely (one per row) in a trailing region, so they no longer pay an 8-row
    padding slot each.  Returns (slab, meta) with meta[name] = (row, rows, cols).
    """
    mats, vecs = [], []
    for name, a in named:
        a = _as2d(a)
        assert a.shape[1] <= 128, (name, a.shape)
        (mats if a.shape[0] > 1 else vecs).append((name, a))

    meta, row = {}, 0
    for name, a in mats:
        r, c = a.shape
        meta[name] = (row, r, c)
        row += (-(-r // 8)) * 8
    for name, a in vecs:
        meta[name] = (row, 1, a.shape[1])
        row += 1
    total = max((-(-row // 8)) * 8, 8)

    slab = jnp.zeros((total, 128), jnp.float32)
    for name, a in mats + vecs:
        off, r, c = meta[name]
        slab = slab.at[off:off + r, 0:c].set(a)
    return slab, meta


# --------------------------------- the kernel ---------------------------------

def build_kernel(meta, B, S):
    N = B * S
    N2 = 2 * N      # two heads stacked along the sublane axis
    E, H = EMBED_DIM, HEAD_DIM

    def kernel(x_ref, slab_ref, b1_ref, w1_ref, w2_ref, out_ref):
        def g(name):
            off, r, c = meta[name]
            if r > 1:
                return slab_ref[off:off + r, 0:c]          # 8-aligned window
            base = (off // 8) * 8                           # aligned block load,
            blk = slab_ref[base:base + 8, 0:c]              # then an in-vreg
            return blk[off - base:off - base + 1, :]        # sublane select

        x2 = x_ref[...]                                     # (N, INPUT_DIM)
        mask = g('mask')                                    # (2N, 2N) additive

        def layernorm(x, name):
            mu = jnp.mean(x, axis=-1, keepdims=True)
            xc = x - mu
            var = jnp.mean(xc * xc, axis=-1, keepdims=True)
            return xc * jax.lax.rsqrt(var + LN_EPS) * g(name + '_g') + g(name + '_b')

        def mha(xq, xkv, prefix, fused):
            wqkv = g(prefix + '_wqkv')                      # (E, 3E): [Wq | Wk | Wv], 1/sqrt(H) folded into Wq
            bqkv = g(prefix + '_bqkv')                      # (1, 3E)
            if fused:                                       # self-attention: one QKV matmul
                qkv = jnp.dot(xq, wqkv, preferred_element_type=jnp.float32) + bqkv
                q, kv = qkv[:, 0:E], qkv[:, E:3 * E]
            else:                                           # cross-attention: separate Q and KV
                q = jnp.dot(xq, wqkv[:, 0:E],
                            preferred_element_type=jnp.float32) + bqkv[:, 0:E]
                kv = jnp.dot(xkv, wqkv[:, E:3 * E],
                             preferred_element_type=jnp.float32) + bqkv[:, E:3 * E]
            # Stack the 2 heads along sublanes so scores / softmax / P.V run once
            # on (2N,2N)/(2N,H) tiles; head and batch blocking live in `mask`.
            q_s = jnp.concatenate([q[:, 0:H], q[:, H:E]], axis=0)             # (2N, H)
            k_s = jnp.concatenate([kv[:, 0:H], kv[:, H:E]], axis=0)           # (2N, H)
            v_s = jnp.concatenate([kv[:, E:E + H], kv[:, E + H:2 * E]], axis=0)
            s = jax.lax.dot_general(q_s, k_s, (((1,), (1,)), ((), ())),
                                    preferred_element_type=jnp.float32) + mask
            s = s - jnp.max(s, axis=-1, keepdims=True)
            e = jnp.exp(s)
            # approx reciprocal runs on the EUP slot; ~1e-4 rel. error vs exact softmax
            pr = e * pl.reciprocal(jnp.sum(e, axis=-1, keepdims=True), approx=True)
            ctx = jnp.dot(pr, v_s, preferred_element_type=jnp.float32)        # (2N, H)
            ctx = jnp.concatenate([ctx[0:N, :], ctx[N:N2, :]], axis=-1)       # (N, E)
            return (jnp.dot(ctx, g(prefix + '_wo'),
                            preferred_element_type=jnp.float32) + g(prefix + '_bo'))

        def ffn(x, idx, b2_name):
            cdt = w1_ref.dtype                              # bf16 (or f32 if flag off)
            h1 = jnp.dot(x.astype(cdt), w1_ref[idx],        # (N, FFN_DIM)
                         preferred_element_type=jnp.float32) + b1_ref[idx:idx + 1, :]
            h1 = jnp.maximum(h1, 0.0)
            # w2 stored lane-dense as (E, FFN_DIM); contract on its last dim.
            h2 = jax.lax.dot_general(h1.astype(cdt), w2_ref[idx],
                                     (((1,), (1,)), ((), ())),
                                     preferred_element_type=jnp.float32)
            return h2 + g(b2_name)

        # embedding (+dropout == identity in eval mode); emb_w is lane-dense (E, INPUT_DIM)
        h = jax.lax.dot_general(x2, g('emb_w'), (((1,), (1,)), ((), ())),
                                preferred_element_type=jnp.float32) + g('emb_b')

        # ------------------ encoder layer (post-LN, relu FFN) ------------------
        h = layernorm(h + mha(h, h, 'esa', fused=True), 'enc_ln1')
        h = layernorm(h + ffn(h, 0, 'enc_b2'), 'enc_ln2')
        mem = h

        # ------------- decoder layer (post-LN); tgt == memory == encoded -------
        d = layernorm(mem + mha(mem, mem, 'dsa', fused=True), 'dec_ln1')
        d = layernorm(d + mha(d, mem, 'dca', fused=False), 'dec_ln2')
        d = layernorm(d + ffn(d, 1, 'dec_b2'), 'dec_ln3')

        # output projection
        out_ref[...] = (jnp.dot(d, g('fc_w'),
                                preferred_element_type=jnp.float32) + g('fc_b'))

    return kernel


def make_forward(meta, B, S):
    kernel = build_kernel(meta, B, S)
    N = B * S

    call = pl.pallas_call(
        kernel,
        out_shape=jax.ShapeDtypeStruct((N, INPUT_DIM), jnp.float32),
        in_specs=[pl.BlockSpec(memory_space=pltpu.MemorySpace.VMEM)] * 5,
        out_specs=pl.BlockSpec(memory_space=pltpu.MemorySpace.VMEM),
    )

    @jax.jit
    def forward(x, slab, ffn_b1, w1, w2):
        # Flatten (B, S) -> N in the wrapper so the kernel body has no reshapes
        # across the (8,128)-tiled layout.  Single grid point: the whole model
        # fits in <0.5 MiB of VMEM and is latency-bound.
        y = call(x.reshape(N, INPUT_DIM), slab, ffn_b1, w1, w2)
        return y.reshape(B, S, INPUT_DIM)

    return forward


# ---------------------- parameter construction / conversion -------------------

def init_torch_like_params(key):
    """Deterministic synthetic parameters in the PyTorch module's natural shapes."""
    keys = iter(jax.random.split(key, 64))

    def w(shape, scale=0.05):
        return jax.random.normal(next(keys), shape, jnp.float32) * scale

    def linear(out_f, in_f):
        return {'weight': w((out_f, in_f)), 'bias': w((out_f,))}

    def mha():
        return {'in_proj_weight': w((3 * EMBED_DIM, EMBED_DIM)),
                'in_proj_bias': w((3 * EMBED_DIM,)),
                'out_proj_weight': w((EMBED_DIM, EMBED_DIM)),
                'out_proj_bias': w((EMBED_DIM,))}

    def ln():
        return {'weight': jnp.ones((EMBED_DIM,), jnp.float32),
                'bias': jnp.zeros((EMBED_DIM,), jnp.float32)}

    return {
        'embedding': linear(EMBED_DIM, INPUT_DIM),
        'enc': {'self_attn': mha(), 'linear1': linear(FFN_DIM, EMBED_DIM),
                'linear2': linear(EMBED_DIM, FFN_DIM), 'norm1': ln(), 'norm2': ln()},
        'dec': {'self_attn': mha(), 'cross_attn': mha(),
                'linear1': linear(FFN_DIM, EMBED_DIM), 'linear2': linear(EMBED_DIM, FFN_DIM),
                'norm1': ln(), 'norm2': ln(), 'norm3': ln()},
        'fc_out': linear(INPUT_DIM, EMBED_DIM),
    }


def prepare_kernel_inputs(p, B, S):
    """Host-side preprocessing: transpose, fuse QKV, fold scale, build mask, pack."""
    named = []
    add = lambda name, arr: named.append((name, arr))
    N = B * S

    # Additive (2N, 2N) mask for the head-stacked score matmul: rows/cols are
    # [head0 | head1] x [batch0 | batch1] blocks of size S; attention is allowed
    # only within the same head AND same batch -> block-diagonal with block S.
    blk = jnp.arange(2 * N) // S
    mask = jnp.where(blk[:, None] == blk[None, :], 0.0, -1e30).astype(jnp.float32)
    add('mask', mask)

    add('emb_w', p['embedding']['weight'])                     # (E, 72), lane-dense
    add('emb_b', p['embedding']['bias'])

    scale = 1.0 / (HEAD_DIM ** 0.5)

    def add_mha(prefix, m):
        wq = m['in_proj_weight'][0:EMBED_DIM].T * scale        # scale folded into Wq/bq
        wk = m['in_proj_weight'][EMBED_DIM:2 * EMBED_DIM].T
        wv = m['in_proj_weight'][2 * EMBED_DIM:3 * EMBED_DIM].T
        bq = m['in_proj_bias'][0:EMBED_DIM] * scale
        bk = m['in_proj_bias'][EMBED_DIM:2 * EMBED_DIM]
        bv = m['in_proj_bias'][2 * EMBED_DIM:3 * EMBED_DIM]
        add(prefix + '_wqkv', jnp.concatenate([wq, wk, wv], axis=1))   # (E, 3E)
        add(prefix + '_bqkv', jnp.concatenate([bq, bk, bv], axis=0))   # (3E,)
        add(prefix + '_wo', m['out_proj_weight'].T)                    # (E, E)
        add(prefix + '_bo', m['out_proj_bias'])

    add_mha('esa', p['enc']['self_attn'])
    add('enc_ln1_g', p['enc']['norm1']['weight']); add('enc_ln1_b', p['enc']['norm1']['bias'])
    add('enc_b2', p['enc']['linear2']['bias'])
    add('enc_ln2_g', p['enc']['norm2']['weight']); add('enc_ln2_b', p['enc']['norm2']['bias'])

    add_mha('dsa', p['dec']['self_attn'])
    add('dec_ln1_g', p['dec']['norm1']['weight']); add('dec_ln1_b', p['dec']['norm1']['bias'])
    add_mha('dca', p['dec']['cross_attn'])
    add('dec_ln2_g', p['dec']['norm2']['weight']); add('dec_ln2_b', p['dec']['norm2']['bias'])
    add('dec_b2', p['dec']['linear2']['bias'])
    add('dec_ln3_g', p['dec']['norm3']['weight']); add('dec_ln3_b', p['dec']['norm3']['bias'])

    add('fc_w', p['fc_out']['weight'].T)                       # (E, 72)
    add('fc_b', p['fc_out']['bias'])

    slab, meta = pack_slab(named)

    ffn_b1 = jnp.stack([p['enc']['linear1']['bias'],
                        p['dec']['linear1']['bias']], axis=0).astype(jnp.float32)   # (2, FFN)
    w_dt = jnp.bfloat16 if FFN_WEIGHTS_BF16 else jnp.float32
    # Both FFN weights stored lane-dense as (2, E, FFN_DIM); w2 is contracted on
    # its last dim inside the kernel (no 2048-row, 12-lane padded layout).
    w1 = jnp.stack([p['enc']['linear1']['weight'].T,
                    p['dec']['linear1']['weight'].T], axis=0).astype(w_dt)           # (2, E, FFN)
    w2 = jnp.stack([p['enc']['linear2']['weight'],
                    p['dec']['linear2']['weight']], axis=0).astype(w_dt)             # (2, E, FFN)
    return slab, meta, ffn_b1, w1, w2


# ------------------------------------ main -------------------------------------

if __name__ == "__main__":
    key = jax.random.PRNGKey(0)
    k_x, k_p = jax.random.split(key)

    B, S = 2, 8
    x = jax.random.normal(k_x, (B, S, INPUT_DIM), jnp.float32)

    torch_like = init_torch_like_params(k_p)
    slab, meta, ffn_b1, w1, w2 = prepare_kernel_inputs(torch_like, B, S)

    # TODO(synk): training-mode stochastic dropout (p=0.1) is not implemented;
    # this kernel reproduces eval()/inference forward semantics.
    forward = make_forward(meta, B, S)
    y = forward(x, slab, ffn_b1, w1, w2)
    y = jax.block_until_ready(y)

    assert y.shape == (B, S, INPUT_DIM), y.shape
    assert bool(jnp.all(jnp.isfinite(y)))
    print("KERNEL_OK")
</pallas_src>

<mosaic_0001>
module attributes {stable_mosaic.version = 11 : i64} {
  func.func @kernel(%arg0: memref<16x72xf32, #tpu.memory_space<vmem>>, %arg1: memref<184x128xf32, #tpu.memory_space<vmem>>, %arg2: memref<2x2048xf32, #tpu.memory_space<vmem>>, %arg3: memref<2x12x2048xbf16, #tpu.memory_space<vmem>>, %arg4: memref<2x12x2048xbf16, #tpu.memory_space<vmem>>, %arg5: memref<16x72xf32, #tpu.memory_space<vmem>>) attributes {dimension_semantics = [], scalar_prefetch = 0 : i64, scratch_operands = 0 : i64, tpu.core_type = #tpu.core_type<tc>} {
    %c0 = arith.constant 0 : index
    %c0_0 = arith.constant 0 : index
    %0 = vector.load %arg0[%c0, %c0_0] : memref<16x72xf32, #tpu.memory_space<vmem>>, vector<16x72xf32>
    %c0_1 = arith.constant 0 : index
    %c0_2 = arith.constant 0 : index
    %1 = vector.load %arg1[%c0_1, %c0_2] : memref<184x128xf32, #tpu.memory_space<vmem>>, vector<32x32xf32>
    %c32 = arith.constant 32 : index
    %c0_3 = arith.constant 0 : index
    %2 = vector.load %arg1[%c32, %c0_3] : memref<184x128xf32, #tpu.memory_space<vmem>>, vector<12x72xf32>
    %cst = arith.constant dense<0.000000e+00> : vector<16x12xf32>
    %3 = tpu.matmul %0, %2, %cst {dimension_numbers = #tpu.dot_dimension_numbers<[1], [1], [0], [0], [0, 0, 1, 0], [], []>} : vector<16x72xf32>, vector<12x72xf32>, vector<16x12xf32> -> vector<16x12xf32>
    %c160 = arith.constant 160 : index
    %c0_4 = arith.constant 0 : index
    %4 = vector.load %arg1[%c160, %c0_4] : memref<184x128xf32, #tpu.memory_space<vmem>>, vector<8x12xf32>
    %5 = vector.extract_strided_slice %4 {offsets = [0, 0], sizes = [1, 12], strides = [1, 1]} : vector<8x12xf32> to vector<1x12xf32>
    %6 = vector.broadcast %5 : vector<1x12xf32> to vector<16x12xf32>
    %7 = arith.addf %3, %6 : vector<16x12xf32>
    %c48 = arith.constant 48 : index
    %c0_5 = arith.constant 0 : index
    %8 = vector.load %arg1[%c48, %c0_5] : memref<184x128xf32, #tpu.memory_space<vmem>>, vector<12x36xf32>
    %c160_6 = arith.constant 160 : index
    %c0_7 = arith.constant 0 : index
    %9 = vector.load %arg1[%c160_6, %c0_7] : memref<184x128xf32, #tpu.memory_space<vmem>>, vector<8x36xf32>
    %10 = vector.extract_strided_slice %9 {offsets = [1, 0], sizes = [1, 36], strides = [1, 1]} : vector<8x36xf32> to vector<1x36xf32>
    %cst_8 = arith.constant dense<0.000000e+00> : vector<16x36xf32>
    %11 = tpu.matmul %7, %8, %cst_8 {dimension_numbers = #tpu.dot_dimension_numbers<[1], [0], [0], [1], [0, 0, 1, 1], [], []>} : vector<16x12xf32>, vector<12x36xf32>, vector<16x36xf32> -> vector<16x36xf32>
    %12 = vector.broadcast %10 : vector<1x36xf32> to vector<16x36xf32>
    %13 = arith.addf %11, %12 : vector<16x36xf32>
    %14 = vector.extract_strided_slice %13 {offsets = [0, 0], sizes = [16, 12], strides = [1, 1]} : vector<16x36xf32> to vector<16x12xf32>
    %15 = vector.extract_strided_slice %13 {offsets = [0, 12], sizes = [16, 24], strides = [1, 1]} : vector<16x36xf32> to vector<16x24xf32>
    %16 = vector.extract_strided_slice %14 {offsets = [0, 0], sizes = [16, 6], strides = [1, 1]} : vector<16x12xf32> to vector<16x6xf32>
    %17 = vector.extract_strided_slice %14 {offsets = [0, 6], sizes = [16, 6], strides = [1, 1]} : vector<16x12xf32> to vector<16x6xf32>
    %18 = tpu.concatenate %16, %17 in 0 : vector<16x6xf32>, vector<16x6xf32> -> vector<32x6xf32>
    %19 = vector.extract_strided_slice %15 {offsets = [0, 0], sizes = [16, 6], strides = [1, 1]} : vector<16x24xf32> to vector<16x6xf32>
    %20 = vector.extract_strided_slice %15 {offsets = [0, 6], sizes = [16, 6], strides = [1, 1]} : vector<16x24xf32> to vector<16x6xf32>
    %21 = tpu.concatenate %19, %20 in 0 : vector<16x6xf32>, vector<16x6xf32> -> vector<32x6xf32>
    %22 = vector.extract_strided_slice %15 {offsets = [0, 12], sizes = [16, 6], strides = [1, 1]} : vector<16x24xf32> to vector<16x6xf32>
    %23 = vector.extract_strided_slice %15 {offsets = [0, 18], sizes = [16, 6], strides = [1, 1]} : vector<16x24xf32> to vector<16x6xf32>
    %24 = tpu.concatenate %22, %23 in 0 : vector<16x6xf32>, vector<16x6xf32> -> vector<32x6xf32>
    %cst_9 = arith.constant dense<0.000000e+00> : vector<32x32xf32>
    %25 = tpu.matmul %18, %21, %cst_9 {dimension_numbers = #tpu.dot_dimension_numbers<[1], [1], [0], [0], [0, 0, 1, 0], [], []>} : vector<32x6xf32>, vector<32x6xf32>, vector<32x32xf32> -> vector<32x32xf32>
    %26 = arith.addf %25, %1 : vector<32x32xf32>
    %cst_10 = arith.constant dense<0xFF800000> : vector<32xf32>
    %27 = vector.multi_reduction <maximumf>, %26, %cst_10 [1] : vector<32x32xf32> to vector<32xf32>
    %28 = vector.shape_cast %27 : vector<32xf32> to vector<32x1xf32>
    %29 = vector.broadcast %28 : vector<32x1xf32> to vector<32x32xf32>
    %30 = arith.subf %26, %29 : vector<32x32xf32>
    %31 = math.exp %30 : vector<32x32xf32>
    %cst_11 = arith.constant dense<0.000000e+00> : vector<32xf32>
    %32 = vector.multi_reduction <add>, %31, %cst_11 [1] : vector<32x32xf32> to vector<32xf32>
    %33 = vector.shape_cast %32 : vector<32xf32> to vector<32x1xf32>
    %34 = tpu.reciprocal %33 {approx = true} : vector<32x1xf32> -> vector<32x1xf32>
    %35 = vector.broadcast %34 : vector<32x1xf32> to vector<32x32xf32>
    %36 = arith.mulf %31, %35 : vector<32x32xf32>
    %cst_12 = arith.constant dense<0.000000e+00> : vector<32x6xf32>
    %37 = tpu.matmul %36, %24, %cst_12 {dimension_numbers = #tpu.dot_dimension_numbers<[1], [0], [0], [1], [0, 0, 1, 1], [], []>} : vector<32x32xf32>, vector<32x6xf32>, vector<32x6xf32> -> vector<32x6xf32>
    %38 = vector.extract_strided_slice %37 {offsets = [0, 0], sizes = [16, 6], strides = [1, 1]} : vector<32x6xf32> to vector<16x6xf32>
    %39 = vector.extract_strided_slice %37 {offsets = [16, 0], sizes = [16, 6], strides = [1, 1]} : vector<32x6xf32> to vector<16x6xf32>
    %40 = tpu.concatenate %38, %39 in 1 : vector<16x6xf32>, vector<16x6xf32> -> vector<16x12xf32>
    %c64 = arith.constant 64 : index
    %c0_13 = arith.constant 0 : index
    %41 = vector.load %arg1[%c64, %c0_13] : memref<184x128xf32, #tpu.memory_space<vmem>>, vector<12x12xf32>
    %cst_14 = arith.constant dense<0.000000e+00> : vector<16x12xf32>
    %42 = tpu.matmul %40, %41, %cst_14 {dimension_numbers = #tpu.dot_dimension_numbers<[1], [0], [0], [1], [0, 0, 1, 1], [], []>} : vector<16x12xf32>, vector<12x12xf32>, vector<16x12xf32> -> vector<16x12xf32>
    %c160_15 = arith.constant 160 : index
    %c0_16 = arith.constant 0 : index
    %43 = vector.load %arg1[%c160_15, %c0_16] : memref<184x128xf32, #tpu.memory_space<vmem>>, vector<8x12xf32>
    %44 = vector.extract_strided_slice %43 {offsets = [2, 0], sizes = [1, 12], strides = [1, 1]} : vector<8x12xf32> to vector<1x12xf32>
    %45 = vector.broadcast %44 : vector<1x12xf32> to vector<16x12xf32>
    %46 = arith.addf %42, %45 : vector<16x12xf32>
    %47 = arith.addf %7, %46 : vector<16x12xf32>
    %cst_17 = arith.constant dense<0.000000e+00> : vector<16xf32>
    %48 = vector.multi_reduction <add>, %47, %cst_17 [1] : vector<16x12xf32> to vector<16xf32>
    %49 = vector.shape_cast %48 : vector<16xf32> to vector<16x1xf32>
    %cst_18 = arith.constant 1.200000e+01 : f32
    %50 = vector.broadcast %cst_18 : f32 to vector<16x1xf32>
    %51 = arith.divf %49, %50 : vector<16x1xf32>
    %52 = vector.broadcast %51 : vector<16x1xf32> to vector<16x12xf32>
    %53 = arith.subf %47, %52 : vector<16x12xf32>
    %54 = arith.mulf %53, %53 : vector<16x12xf32>
    %cst_19 = arith.constant dense<0.000000e+00> : vector<16xf32>
    %55 = vector.multi_reduction <add>, %54, %cst_19 [1] : vector<16x12xf32> to vector<16xf32>
    %56 = vector.shape_cast %55 : vector<16xf32> to vector<16x1xf32>
    %cst_20 = arith.constant 1.200000e+01 : f32
    %57 = vector.broadcast %cst_20 : f32 to vector<16x1xf32>
    %58 = arith.divf %56, %57 : vector<16x1xf32>
    %cst_21 = arith.constant 9.99999974E-6 : f32
    %59 = vector.broadcast %cst_21 : f32 to vector<16x1xf32>
    %60 = arith.addf %58, %59 : vector<16x1xf32>
    %61 = math.rsqrt %60 : vector<16x1xf32>
    %62 = vector.broadcast %61 : vector<16x1xf32> to vector<16x12xf32>
    %63 = arith.mulf %53, %62 : vector<16x12xf32>
    %c160_22 = arith.constant 160 : index
    %c0_23 = arith.constant 0 : index
    %64 = vector.load %arg1[%c160_22, %c0_23] : memref<184x128xf32, #tpu.memory_space<vmem>>, vector<8x12xf32>
    %65 = vector.extract_strided_slice %64 {offsets = [3, 0], sizes = [1, 12], strides = [1, 1]} : vector<8x12xf32> to vector<1x12xf32>
    %66 = vector.broadcast %65 : vector<1x12xf32> to vector<16x12xf32>
    %67 = arith.mulf %63, %66 : vector<16x12xf32>
    %c160_24 = arith.constant 160 : index
    %c0_25 = arith.constant 0 : index
    %68 = vector.load %arg1[%c160_24, %c0_25] : memref<184x128xf32, #tpu.memory_space<vmem>>, vector<8x12xf32>
    %69 = vector.extract_strided_slice %68 {offsets = [4, 0], sizes = [1, 12], strides = [1, 1]} : vector<8x12xf32> to vector<1x12xf32>
    %70 = vector.broadcast %69 : vector<1x12xf32> to vector<16x12xf32>
    %71 = arith.addf %67, %70 : vector<16x12xf32>
    %72 = arith.truncf %71 : vector<16x12xf32> to vector<16x12xbf16>
    %c0_26 = arith.constant 0 : index
    %c0_27 = arith.constant 0 : index
    %c0_28 = arith.constant 0 : index
    %73 = vector.load %arg3[%c0_26, %c0_27, %c0_28] : memref<2x12x2048xbf16, #tpu.memory_space<vmem>>, vector<1x12x2048xbf16>
    %74 = vector.shape_cast %73 : vector<1x12x2048xbf16> to vector<12x2048xbf16>
    %cst_29 = arith.constant dense<0.000000e+00> : vector<16x2048xf32>
    %75 = tpu.matmul %72, %74, %cst_29 {dimension_numbers = #tpu.dot_dimension_numbers<[1], [0], [0], [1], [0, 0, 1, 1], [], []>} : vector<16x12xbf16>, vector<12x2048xbf16>, vector<16x2048xf32> -> vector<16x2048xf32>
    %c0_30 = arith.constant 0 : index
    %c0_31 = arith.constant 0 : index
    %76 = vector.load %arg2[%c0_30, %c0_31] : memref<2x2048xf32, #tpu.memory_space<vmem>>, vector<1x2048xf32>
    %77 = vector.broadcast %76 : vector<1x2048xf32> to vector<16x2048xf32>
    %78 = arith.addf %75, %77 : vector<16x2048xf32>
    %cst_32 = arith.constant 0.000000e+00 : f32
    %79 = vector.broadcast %cst_32 : f32 to vector<16x2048xf32>
    %80 = arith.maximumf %78, %79 : vector<16x2048xf32>
    %81 = arith.truncf %80 : vector<16x2048xf32> to vector<16x2048xbf16>
    %c0_33 = arith.constant 0 : index
    %c0_34 = arith.constant 0 : index
    %c0_35 = arith.constant 0 : index
    %82 = vector.load %arg4[%c0_33, %c0_34, %c0_35] : memref<2x12x2048xbf16, #tpu.memory_space<vmem>>, vector<1x12x2048xbf16>
    %83 = vector.shape_cast %82 : vector<1x12x2048xbf16> to vector<12x2048xbf16>
    %cst_36 = arith.constant dense<0.000000e+00> : vector<16x12xf32>
    %84 = tpu.matmul %81, %83, %cst_36 {dimension_numbers = #tpu.dot_dimension_numbers<[1], [1], [0], [0], [0, 0, 1, 0], [], []>} : vector<16x2048xbf16>, vector<12x2048xbf16>, vector<16x12xf32> -> vector<16x12xf32>
    %c160_37 = arith.constant 160 : index
    %c0_38 = arith.constant 0 : index
    %85 = vector.load %arg1[%c160_37, %c0_38] : memref<184x128xf32, #tpu.memory_space<vmem>>, vector<8x12xf32>
    %86 = vector.extract_strided_slice %85 {offsets = [5, 0], sizes = [1, 12], strides = [1, 1]} : vector<8x12xf32> to vector<1x12xf32>
    %87 = vector.broadcast %86 : vector<1x12xf32> to vector<16x12xf32>
    %88 = arith.addf %84, %87 : vector<16x12xf32>
    %89 = arith.addf %71, %88 : vector<16x12xf32>
    %cst_39 = arith.constant dense<0.000000e+00> : vector<16xf32>
    %90 = vector.multi_reduction <add>, %89, %cst_39 [1] : vector<16x12xf32> to vector<16xf32>
    %91 = vector.shape_cast %90 : vector<16xf32> to vector<16x1xf32>
    %cst_40 = arith.constant 1.200000e+01 : f32
    %92 = vector.broadcast %cst_40 : f32 to vector<16x1xf32>
    %93 = arith.divf %91, %92 : vector<16x1xf32>
    %94 = vector.broadcast %93 : vector<16x1xf32> to vector<16x12xf32>
    %95 = arith.subf %89, %94 : vector<16x12xf32>
    %96 = arith.mulf %95, %95 : vector<16x12xf32>
    %cst_41 = arith.constant dense<0.000000e+00> : vector<16xf32>
    %97 = vector.multi_reduction <add>, %96, %cst_41 [1] : vector<16x12xf32> to vector<16xf32>
    %98 = vector.shape_cast %97 : vector<16xf32> to vector<16x1xf32>
    %cst_42 = arith.constant 1.200000e+01 : f32
    %99 = vector.broadcast %cst_42 : f32 to vector<16x1xf32>
    %100 = arith.divf %98, %99 : vector<16x1xf32>
    %cst_43 = arith.constant 9.99999974E-6 : f32
    %101 = vector.broadcast %cst_43 : f32 to vector<16x1xf32>
    %102 = arith.addf %100, %101 : vector<16x1xf32>
    %103 = math.rsqrt %102 : vector<16x1xf32>
    %104 = vector.broadcast %103 : vector<16x1xf32> to vector<16x12xf32>
    %105 = arith.mulf %95, %104 : vector<16x12xf32>
    %c160_44 = arith.constant 160 : index
    %c0_45 = arith.constant 0 : index
    %106 = vector.load %arg1[%c160_44, %c0_45] : memref<184x128xf32, #tpu.memory_space<vmem>>, vector<8x12xf32>
    %107 = vector.extract_strided_slice %106 {offsets = [6, 0], sizes = [1, 12], strides = [1, 1]} : vector<8x12xf32> to vector<1x12xf32>
    %108 = vector.broadcast %107 : vector<1x12xf32> to vector<16x12xf32>
    %109 = arith.mulf %105, %108 : vector<16x12xf32>
    %c160_46 = arith.constant 160 : index
    %c0_47 = arith.constant 0 : index
    %110 = vector.load %arg1[%c160_46, %c0_47] : memref<184x128xf32, #tpu.memory_space<vmem>>, vector<8x12xf32>
    %111 = vector.extract_strided_slice %110 {offsets = [7, 0], sizes = [1, 12], strides = [1, 1]} : vector<8x12xf32> to vector<1x12xf32>
    %112 = vector.broadcast %111 : vector<1x12xf32> to vector<16x12xf32>
    %113 = arith.addf %109, %112 : vector<16x12xf32>
    %c80 = arith.constant 80 : index
    %c0_48 = arith.constant 0 : index
    %114 = vector.load %arg1[%c80, %c0_48] : memref<184x128xf32, #tpu.memory_space<vmem>>, vector<12x36xf32>
    %c168 = arith.constant 168 : index
    %c0_49 = arith.constant 0 : index
    %115 = vector.load %arg1[%c168, %c0_49] : memref<184x128xf32, #tpu.memory_space<vmem>>, vector<8x36xf32>
    %116 = vector.extract_strided_slice %115 {offsets = [0, 0], sizes = [1, 36], strides = [1, 1]} : vector<8x36xf32> to vector<1x36xf32>
    %cst_50 = arith.constant dense<0.000000e+00> : vector<16x36xf32>
    %117 = tpu.matmul %113, %114, %cst_50 {dimension_numbers = #tpu.dot_dimension_numbers<[1], [0], [0], [1], [0, 0, 1, 1], [], []>} : vector<16x12xf32>, vector<12x36xf32>, vector<16x36xf32> -> vector<16x36xf32>
    %118 = vector.broadcast %116 : vector<1x36xf32> to vector<16x36xf32>
    %119 = arith.addf %117, %118 : vector<16x36xf32>
    %120 = vector.extract_strided_slice %119 {offsets = [0, 0], sizes = [16, 12], strides = [1, 1]} : vector<16x36xf32> to vector<16x12xf32>
    %121 = vector.extract_strided_slice %119 {offsets = [0, 12], sizes = [16, 24], strides = [1, 1]} : vector<16x36xf32> to vector<16x24xf32>
    %122 = vector.extract_strided_slice %120 {offsets = [0, 0], sizes = [16, 6], strides = [1, 1]} : vector<16x12xf32> to vector<16x6xf32>
    %123 = vector.extract_strided_slice %120 {offsets = [0, 6], sizes = [16, 6], strides = [1, 1]} : vector<16x12xf32> to vector<16x6xf32>
    %124 = tpu.concatenate %122, %123 in 0 : vector<16x6xf32>, vector<16x6xf32> -> vector<32x6xf32>
    %125 = vector.extract_strided_slice %121 {offsets = [0, 0], sizes = [16, 6], strides = [1, 1]} : vector<16x24xf32> to vector<16x6xf32>
    %126 = vector.extract_strided_slice %121 {offsets = [0, 6], sizes = [16, 6], strides = [1, 1]} : vector<16x24xf32> to vector<16x6xf32>
    %127 = tpu.concatenate %125, %126 in 0 : vector<16x6xf32>, vector<16x6xf32> -> vector<32x6xf32>
    %128 = vector.extract_strided_slice %121 {offsets = [0, 12], sizes = [16, 6], strides = [1, 1]} : vector<16x24xf32> to vector<16x6xf32>
    %129 = vector.extract_strided_slice %121 {offsets = [0, 18], sizes = [16, 6], strides = [1, 1]} : vector<16x24xf32> to vector<16x6xf32>
    %130 = tpu.concatenate %128, %129 in 0 : vector<16x6xf32>, vector<16x6xf32> -> vector<32x6xf32>
    %cst_51 = arith.constant dense<0.000000e+00> : vector<32x32xf32>
    %131 = tpu.matmul %124, %127, %cst_51 {dimension_numbers = #tpu.dot_dimension_numbers<[1], [1], [0], [0], [0, 0, 1, 0], [], []>} : vector<32x6xf32>, vector<32x6xf32>, vector<32x32xf32> -> vector<32x32xf32>
    %132 = arith.addf %131, %1 : vector<32x32xf32>
    %cst_52 = arith.constant dense<0xFF800000> : vector<32xf32>
    %133 = vector.multi_reduction <maximumf>, %132, %cst_52 [1] : vector<32x32xf32> to vector<32xf32>
    %134 = vector.shape_cast %133 : vector<32xf32> to vector<32x1xf32>
    %135 = vector.broadcast %134 : vector<32x1xf32> to vector<32x32xf32>
    %136 = arith.subf %132, %135 : vector<32x32xf32>
    %137 = math.exp %136 : vector<32x32xf32>
    %cst_53 = arith.constant dense<0.000000e+00> : vector<32xf32>
    %138 = vector.multi_reduction <add>, %137, %cst_53 [1] : vector<32x32xf32> to vector<32xf32>
    %139 = vector.shape_cast %138 : vector<32xf32> to vector<32x1xf32>
    %140 = tpu.reciprocal %139 {approx = true} : vector<32x1xf32> -> vector<32x1xf32>
    %141 = vector.broadcast %140 : vector<32x1xf32> to vector<32x32xf32>
    %142 = arith.mulf %137, %141 : vector<32x32xf32>
    %cst_54 = arith.constant dense<0.000000e+00> : vector<32x6xf32>
    %143 = tpu.matmul %142, %130, %cst_54 {dimension_numbers = #tpu.dot_dimension_numbers<[1], [0], [0], [1], [0, 0, 1, 1], [], []>} : vector<32x32xf32>, vector<32x6xf32>, vector<32x6xf32> -> vector<32x6xf32>
    %144 = vector.extract_strided_slice %143 {offsets = [0, 0], sizes = [16, 6], strides = [1, 1]} : vector<32x6xf32> to vector<16x6xf32>
    %145 = vector.extract_strided_slice %143 {offsets = [16, 0], sizes = [16, 6], strides = [1, 1]} : vector<32x6xf32> to vector<16x6xf32>
    %146 = tpu.concatenate %144, %145 in 1 : vector<16x6xf32>, vector<16x6xf32> -> vector<16x12xf32>
    %c96 = arith.constant 96 : index
    %c0_55 = arith.constant 0 : index
    %147 = vector.load %arg1[%c96, %c0_55] : memref<184x128xf32, #tpu.memory_space<vmem>>, vector<12x12xf32>
    %cst_56 = arith.constant dense<0.000000e+00> : vector<16x12xf32>
    %148 = tpu.matmul %146, %147, %cst_56 {dimension_numbers = #tpu.dot_dimension_numbers<[1], [0], [0], [1], [0, 0, 1, 1], [], []>} : vector<16x12xf32>, vector<12x12xf32>, vector<16x12xf32> -> vector<16x12xf32>
    %c168_57 = arith.constant 168 : index
    %c0_58 = arith.constant 0 : index
    %149 = vector.load %arg1[%c168_57, %c0_58] : memref<184x128xf32, #tpu.memory_space<vmem>>, vector<8x12xf32>
    %150 = vector.extract_strided_slice %149 {offsets = [1, 0], sizes = [1, 12], strides = [1, 1]} : vector<8x12xf32> to vector<1x12xf32>
    %151 = vector.broadcast %150 : vector<1x12xf32> to vector<16x12xf32>
    %152 = arith.addf %148, %151 : vector<16x12xf32>
    %153 = arith.addf %113, %152 : vector<16x12xf32>
    %cst_59 = arith.constant dense<0.000000e+00> : vector<16xf32>
    %154 = vector.multi_reduction <add>, %153, %cst_59 [1] : vector<16x12xf32> to vector<16xf32>
    %155 = vector.shape_cast %154 : vector<16xf32> to vector<16x1xf32>
    %cst_60 = arith.constant 1.200000e+01 : f32
    %156 = vector.broadcast %cst_60 : f32 to vector<16x1xf32>
    %157 = arith.divf %155, %156 : vector<16x1xf32>
    %158 = vector.broadcast %157 : vector<16x1xf32> to vector<16x12xf32>
    %159 = arith.subf %153, %158 : vector<16x12xf32>
    %160 = arith.mulf %159, %159 : vector<16x12xf32>
    %cst_61 = arith.constant dense<0.000000e+00> : vector<16xf32>
    %161 = vector.multi_reduction <add>, %160, %cst_61 [1] : vector<16x12xf32> to vector<16xf32>
    %162 = vector.shape_cast %161 : vector<16xf32> to vector<16x1xf32>
    %cst_62 = arith.constant 1.200000e+01 : f32
    %163 = vector.broadcast %cst_62 : f32 to vector<16x1xf32>
    %164 = arith.divf %162, %163 : vector<16x1xf32>
    %cst_63 = arith.constant 9.99999974E-6 : f32
    %165 = vector.broadcast %cst_63 : f32 to vector<16x1xf32>
    %166 = arith.addf %164, %165 : vector<16x1xf32>
    %167 = math.rsqrt %166 : vector<16x1xf32>
    %168 = vector.broadcast %167 : vector<16x1xf32> to vector<16x12xf32>
    %169 = arith.mulf %159, %168 : vector<16x12xf32>
    %c168_64 = arith.constant 168 : index
    %c0_65 = arith.constant 0 : index
    %170 = vector.load %arg1[%c168_64, %c0_65] : memref<184x128xf32, #tpu.memory_space<vmem>>, vector<8x12xf32>
    %171 = vector.extract_strided_slice %170 {offsets = [2, 0], sizes = [1, 12], strides = [1, 1]} : vector<8x12xf32> to vector<1x12xf32>
    %172 = vector.broadcast %171 : vector<1x12xf32> to vector<16x12xf32>
    %173 = arith.mulf %169, %172 : vector<16x12xf32>
    %c168_66 = arith.constant 168 : index
    %c0_67 = arith.constant 0 : index
    %174 = vector.load %arg1[%c168_66, %c0_67] : memref<184x128xf32, #tpu.memory_space<vmem>>, vector<8x12xf32>
    %175 = vector.extract_strided_slice %174 {offsets = [3, 0], sizes = [1, 12], strides = [1, 1]} : vector<8x12xf32> to vector<1x12xf32>
    %176 = vector.broadcast %175 : vector<1x12xf32> to vector<16x12xf32>
    %177 = arith.addf %173, %176 : vector<16x12xf32>
    %c112 = arith.constant 112 : index
    %c0_68 = arith.constant 0 : index
    %178 = vector.load %arg1[%c112, %c0_68] : memref<184x128xf32, #tpu.memory_space<vmem>>, vector<12x36xf32>
    %c168_69 = arith.constant 168 : index
    %c0_70 = arith.constant 0 : index
    %179 = vector.load %arg1[%c168_69, %c0_70] : memref<184x128xf32, #tpu.memory_space<vmem>>, vector<8x36xf32>
    %180 = vector.extract_strided_slice %179 {offsets = [4, 0], sizes = [1, 36], strides = [1, 1]} : vector<8x36xf32> to vector<1x36xf32>
    %181 = vector.extract_strided_slice %178 {offsets = [0, 0], sizes = [12, 12], strides = [1, 1]} : vector<12x36xf32> to vector<12x12xf32>
    %cst_71 = arith.constant dense<0.000000e+00> : vector<16x12xf32>
    %182 = tpu.matmul %177, %181, %cst_71 {dimension_numbers = #tpu.dot_dimension_numbers<[1], [0], [0], [1], [0, 0, 1, 1], [], []>} : vector<16x12xf32>, vector<12x12xf32>, vector<16x12xf32> -> vector<16x12xf32>
    %183 = vector.extract_strided_slice %180 {offsets = [0, 0], sizes = [1, 12], strides = [1, 1]} : vector<1x36xf32> to vector<1x12xf32>
    %184 = vector.broadcast %183 : vector<1x12xf32> to vector<16x12xf32>
    %185 = arith.addf %182, %184 : vector<16x12xf32>
    %186 = vector.extract_strided_slice %178 {offsets = [0, 12], sizes = [12, 24], strides = [1, 1]} : vector<12x36xf32> to vector<12x24xf32>
    %cst_72 = arith.constant dense<0.000000e+00> : vector<16x24xf32>
    %187 = tpu.matmul %113, %186, %cst_72 {dimension_numbers = #tpu.dot_dimension_numbers<[1], [0], [0], [1], [0, 0, 1, 1], [], []>} : vector<16x12xf32>, vector<12x24xf32>, vector<16x24xf32> -> vector<16x24xf32>
    %188 = vector.extract_strided_slice %180 {offsets = [0, 12], sizes = [1, 24], strides = [1, 1]} : vector<1x36xf32> to vector<1x24xf32>
    %189 = vector.broadcast %188 : vector<1x24xf32> to vector<16x24xf32>
    %190 = arith.addf %187, %189 : vector<16x24xf32>
    %191 = vector.extract_strided_slice %185 {offsets = [0, 0], sizes = [16, 6], strides = [1, 1]} : vector<16x12xf32> to vector<16x6xf32>
    %192 = vector.extract_strided_slice %185 {offsets = [0, 6], sizes = [16, 6], strides = [1, 1]} : vector<16x12xf32> to vector<16x6xf32>
    %193 = tpu.concatenate %191, %192 in 0 : vector<16x6xf32>, vector<16x6xf32> -> vector<32x6xf32>
    %194 = vector.extract_strided_slice %190 {offsets = [0, 0], sizes = [16, 6], strides = [1, 1]} : vector<16x24xf32> to vector<16x6xf32>
    %195 = vector.extract_strided_slice %190 {offsets = [0, 6], sizes = [16, 6], strides = [1, 1]} : vector<16x24xf32> to vector<16x6xf32>
    %196 = tpu.concatenate %194, %195 in 0 : vector<16x6xf32>, vector<16x6xf32> -> vector<32x6xf32>
    %197 = vector.extract_strided_slice %190 {offsets = [0, 12], sizes = [16, 6], strides = [1, 1]} : vector<16x24xf32> to vector<16x6xf32>
    %198 = vector.extract_strided_slice %190 {offsets = [0, 18], sizes = [16, 6], strides = [1, 1]} : vector<16x24xf32> to vector<16x6xf32>
    %199 = tpu.concatenate %197, %198 in 0 : vector<16x6xf32>, vector<16x6xf32> -> vector<32x6xf32>
    %cst_73 = arith.constant dense<0.000000e+00> : vector<32x32xf32>
    %200 = tpu.matmul %193, %196, %cst_73 {dimension_numbers = #tpu.dot_dimension_numbers<[1], [1], [0], [0], [0, 0, 1, 0], [], []>} : vector<32x6xf32>, vector<32x6xf32>, vector<32x32xf32> -> vector<32x32xf32>
    %201 = arith.addf %200, %1 : vector<32x32xf32>
    %cst_74 = arith.constant dense<0xFF800000> : vector<32xf32>
    %202 = vector.multi_reduction <maximumf>, %201, %cst_74 [1] : vector<32x32xf32> to vector<32xf32>
    %203 = vector.shape_cast %202 : vector<32xf32> to vector<32x1xf32>
    %204 = vector.broadcast %203 : vector<32x1xf32> to vector<32x32xf32>
    %205 = arith.subf %201, %204 : vector<32x32xf32>
    %206 = math.exp %205 : vector<32x32xf32>
    %cst_75 = arith.constant dense<0.000000e+00> : vector<32xf32>
    %207 = vector.multi_reduction <add>, %206, %cst_75 [1] : vector<32x32xf32> to vector<32xf32>
    %208 = vector.shape_cast %207 : vector<32xf32> to vector<32x1xf32>
    %209 = tpu.reciprocal %208 {approx = true} : vector<32x1xf32> -> vector<32x1xf32>
    %210 = vector.broadcast %209 : vector<32x1xf32> to vector<32x32xf32>
    %211 = arith.mulf %206, %210 : vector<32x32xf32>
    %cst_76 = arith.constant dense<0.000000e+00> : vector<32x6xf32>
    %212 = tpu.matmul %211, %199, %cst_76 {dimension_numbers = #tpu.dot_dimension_numbers<[1], [0], [0], [1], [0, 0, 1, 1], [], []>} : vector<32x32xf32>, vector<32x6xf32>, vector<32x6xf32> -> vector<32x6xf32>
    %213 = vector.extract_strided_slice %212 {offsets = [0, 0], sizes = [16, 6], strides = [1, 1]} : vector<32x6xf32> to vector<16x6xf32>
    %214 = vector.extract_strided_slice %212 {offsets = [16, 0], sizes = [16, 6], strides = [1, 1]} : vector<32x6xf32> to vector<16x6xf32>
    %215 = tpu.concatenate %213, %214 in 1 : vector<16x6xf32>, vector<16x6xf32> -> vector<16x12xf32>
    %c128 = arith.constant 128 : index
    %c0_77 = arith.constant 0 : index
    %216 = vector.load %arg1[%c128, %c0_77] : memref<184x128xf32, #tpu.memory_space<vmem>>, vector<12x12xf32>
    %cst_78 = arith.constant dense<0.000000e+00> : vector<16x12xf32>
    %217 = tpu.matmul %215, %216, %cst_78 {dimension_numbers = #tpu.dot_dimension_numbers<[1], [0], [0], [1], [0, 0, 1, 1], [], []>} : vector<16x12xf32>, vector<12x12xf32>, vector<16x12xf32> -> vector<16x12xf32>
    %c168_79 = arith.constant 168 : index
    %c0_80 = arith.constant 0 : index
    %218 = vector.load %arg1[%c168_79, %c0_80] : memref<184x128xf32, #tpu.memory_space<vmem>>, vector<8x12xf32>
    %219 = vector.extract_strided_slice %218 {offsets = [5, 0], sizes = [1, 12], strides = [1, 1]} : vector<8x12xf32> to vector<1x12xf32>
    %220 = vector.broadcast %219 : vector<1x12xf32> to vector<16x12xf32>
    %221 = arith.addf %217, %220 : vector<16x12xf32>
    %222 = arith.addf %177, %221 : vector<16x12xf32>
    %cst_81 = arith.constant dense<0.000000e+00> : vector<16xf32>
    %223 = vector.multi_reduction <add>, %222, %cst_81 [1] : vector<16x12xf32> to vector<16xf32>
    %224 = vector.shape_cast %223 : vector<16xf32> to vector<16x1xf32>
    %cst_82 = arith.constant 1.200000e+01 : f32
    %225 = vector.broadcast %cst_82 : f32 to vector<16x1xf32>
    %226 = arith.divf %224, %225 : vector<16x1xf32>
    %227 = vector.broadcast %226 : vector<16x1xf32> to vector<16x12xf32>
    %228 = arith.subf %222, %227 : vector<16x12xf32>
    %229 = arith.mulf %228, %228 : vector<16x12xf32>
    %cst_83 = arith.constant dense<0.000000e+00> : vector<16xf32>
    %230 = vector.multi_reduction <add>, %229, %cst_83 [1] : vector<16x12xf32> to vector<16xf32>
    %231 = vector.shape_cast %230 : vector<16xf32> to vector<16x1xf32>
    %cst_84 = arith.constant 1.200000e+01 : f32
    %232 = vector.broadcast %cst_84 : f32 to vector<16x1xf32>
    %233 = arith.divf %231, %232 : vector<16x1xf32>
    %cst_85 = arith.constant 9.99999974E-6 : f32
    %234 = vector.broadcast %cst_85 : f32 to vector<16x1xf32>
    %235 = arith.addf %233, %234 : vector<16x1xf32>
    %236 = math.rsqrt %235 : vector<16x1xf32>
    %237 = vector.broadcast %236 : vector<16x1xf32> to vector<16x12xf32>
    %238 = arith.mulf %228, %237 : vector<16x12xf32>
    %c168_86 = arith.constant 168 : index
    %c0_87 = arith.constant 0 : index
    %239 = vector.load %arg1[%c168_86, %c0_87] : memref<184x128xf32, #tpu.memory_space<vmem>>, vector<8x12xf32>
    %240 = vector.extract_strided_slice %239 {offsets = [6, 0], sizes = [1, 12], strides = [1, 1]} : vector<8x12xf32> to vector<1x12xf32>
    %241 = vector.broadcast %240 : vector<1x12xf32> to vector<16x12xf32>
    %242 = arith.mulf %238, %241 : vector<16x12xf32>
    %c168_88 = arith.constant 168 : index
    %c0_89 = arith.constant 0 : index
    %243 = vector.load %arg1[%c168_88, %c0_89] : memref<184x128xf32, #tpu.memory_space<vmem>>, vector<8x12xf32>
    %244 = vector.extract_strided_slice %243 {offsets = [7, 0], sizes = [1, 12], strides = [1, 1]} : vector<8x12xf32> to vector<1x12xf32>
    %245 = vector.broadcast %244 : vector<1x12xf32> to vector<16x12xf32>
    %246 = arith.addf %242, %245 : vector<16x12xf32>
    %247 = arith.truncf %246 : vector<16x12xf32> to vector<16x12xbf16>
    %c1 = arith.constant 1 : index
    %c0_90 = arith.constant 0 : index
    %c0_91 = arith.constant 0 : index
    %248 = vector.load %arg3[%c1, %c0_90, %c0_91] : memref<2x12x2048xbf16, #tpu.memory_space<vmem>>, vector<1x12x2048xbf16>
    %249 = vector.shape_cast %248 : vector<1x12x2048xbf16> to vector<12x2048xbf16>
    %cst_92 = arith.constant dense<0.000000e+00> : vector<16x2048xf32>
    %250 = tpu.matmul %247, %249, %cst_92 {dimension_numbers = #tpu.dot_dimension_numbers<[1], [0], [0], [1], [0, 0, 1, 1], [], []>} : vector<16x12xbf16>, vector<12x2048xbf16>, vector<16x2048xf32> -> vector<16x2048xf32>
    %c1_93 = arith.constant 1 : index
    %c0_94 = arith.constant 0 : index
    %251 = vector.load %arg2[%c1_93, %c0_94] : memref<2x2048xf32, #tpu.memory_space<vmem>>, vector<1x2048xf32>
    %252 = vector.broadcast %251 : vector<1x2048xf32> to vector<16x2048xf32>
    %253 = arith.addf %250, %252 : vector<16x2048xf32>
    %cst_95 = arith.constant 0.000000e+00 : f32
    %254 = vector.broadcast %cst_95 : f32 to vector<16x2048xf32>
    %255 = arith.maximumf %253, %254 : vector<16x2048xf32>
    %256 = arith.truncf %255 : vector<16x2048xf32> to vector<16x2048xbf16>
    %c1_96 = arith.constant 1 : index
    %c0_97 = arith.constant 0 : index
    %c0_98 = arith.constant 0 : index
    %257 = vector.load %arg4[%c1_96, %c0_97, %c0_98] : memref<2x12x2048xbf16, #tpu.memory_space<vmem>>, vector<1x12x2048xbf16>
    %258 = vector.shape_cast %257 : vector<1x12x2048xbf16> to vector<12x2048xbf16>
    %cst_99 = arith.constant dense<0.000000e+00> : vector<16x12xf32>
    %259 = tpu.matmul %256, %258, %cst_99 {dimension_numbers = #tpu.dot_dimension_numbers<[1], [1], [0], [0], [0, 0, 1, 0], [], []>} : vector<16x2048xbf16>, vector<12x2048xbf16>, vector<16x12xf32> -> vector<16x12xf32>
    %c176 = arith.constant 176 : index
    %c0_100 = arith.constant 0 : index
    %260 = vector.load %arg1[%c176, %c0_100] : memref<184x128xf32, #tpu.memory_space<vmem>>, vector<8x12xf32>
    %261 = vector.extract_strided_slice %260 {offsets = [0, 0], sizes = [1, 12], strides = [1, 1]} : vector<8x12xf32> to vector<1x12xf32>
    %262 = vector.broadcast %261 : vector<1x12xf32> to vector<16x12xf32>
    %263 = arith.addf %259, %262 : vector<16x12xf32>
    %264 = arith.addf %246, %263 : vector<16x12xf32>
    %cst_101 = arith.constant dense<0.000000e+00> : vector<16xf32>
    %265 = vector.multi_reduction <add>, %264, %cst_101 [1] : vector<16x12xf32> to vector<16xf32>
    %266 = vector.shape_cast %265 : vector<16xf32> to vector<16x1xf32>
    %cst_102 = arith.constant 1.200000e+01 : f32
    %267 = vector.broadcast %cst_102 : f32 to vector<16x1xf32>
    %268 = arith.divf %266, %267 : vector<16x1xf32>
    %269 = vector.broadcast %268 : vector<16x1xf32> to vector<16x12xf32>
    %270 = arith.subf %264, %269 : vector<16x12xf32>
    %271 = arith.mulf %270, %270 : vector<16x12xf32>
    %cst_103 = arith.constant dense<0.000000e+00> : vector<16xf32>
    %272 = vector.multi_reduction <add>, %271, %cst_103 [1] : vector<16x12xf32> to vector<16xf32>
    %273 = vector.shape_cast %272 : vector<16xf32> to vector<16x1xf32>
    %cst_104 = arith.constant 1.200000e+01 : f32
    %274 = vector.broadcast %cst_104 : f32 to vector<16x1xf32>
    %275 = arith.divf %273, %274 : vector<16x1xf32>
    %cst_105 = arith.constant 9.99999974E-6 : f32
    %276 = vector.broadcast %cst_105 : f32 to vector<16x1xf32>
    %277 = arith.addf %275, %276 : vector<16x1xf32>
    %278 = math.rsqrt %277 : vector<16x1xf32>
    %279 = vector.broadcast %278 : vector<16x1xf32> to vector<16x12xf32>
    %280 = arith.mulf %270, %279 : vector<16x12xf32>
    %c176_106 = arith.constant 176 : index
    %c0_107 = arith.constant 0 : index
    %281 = vector.load %arg1[%c176_106, %c0_107] : memref<184x128xf32, #tpu.memory_space<vmem>>, vector<8x12xf32>
    %282 = vector.extract_strided_slice %281 {offsets = [1, 0], sizes = [1, 12], strides = [1, 1]} : vector<8x12xf32> to vector<1x12xf32>
    %283 = vector.broadcast %282 : vector<1x12xf32> to vector<16x12xf32>
    %284 = arith.mulf %280, %283 : vector<16x12xf32>
    %c176_108 = arith.constant 176 : index
    %c0_109 = arith.constant 0 : index
    %285 = vector.load %arg1[%c176_108, %c0_109] : memref<184x128xf32, #tpu.memory_space<vmem>>, vector<8x12xf32>
    %286 = vector.extract_strided_slice %285 {offsets = [2, 0], sizes = [1, 12], strides = [1, 1]} : vector<8x12xf32> to vector<1x12xf32>
    %287 = vector.broadcast %286 : vector<1x12xf32> to vector<16x12xf32>
    %288 = arith.addf %284, %287 : vector<16x12xf32>
    %c144 = arith.constant 144 : index
    %c0_110 = arith.constant 0 : index
    %289 = vector.load %arg1[%c144, %c0_110] : memref<184x128xf32, #tpu.memory_space<vmem>>, vector<12x72xf32>
    %cst_111 = arith.constant dense<0.000000e+00> : vector<16x72xf32>
    %290 = tpu.matmul %288, %289, %cst_111 {dimension_numbers = #tpu.dot_dimension_numbers<[1], [0], [0], [1], [0, 0, 1, 1], [], []>} : vector<16x12xf32>, vector<12x72xf32>, vector<16x72xf32> -> vector<16x72xf32>
    %c176_112 = arith.constant 176 : index
    %c0_113 = arith.constant 0 : index
    %291 = vector.load %arg1[%c176_112, %c0_113] : memref<184x128xf32, #tpu.memory_space<vmem>>, vector<8x72xf32>
    %292 = vector.extract_strided_slice %291 {offsets = [3, 0], sizes = [1, 72], strides = [1, 1]} : vector<8x72xf32> to vector<1x72xf32>
    %293 = vector.broadcast %292 : vector<1x72xf32> to vector<16x72xf32>
    %294 = arith.addf %290, %293 : vector<16x72xf32>
    %c0_114 = arith.constant 0 : index
    %c0_115 = arith.constant 0 : index
    %295 = vector.load %arg5[%c0_114, %c0_115] : memref<16x72xf32, #tpu.memory_space<vmem>>, vector<16x72xf32>
    tpu.vector_store %arg5[%c0_114, %c0_115], %294 {strides = array<i32>} : memref<16x72xf32, #tpu.memory_space<vmem>>, vector<16x72xf32>,
    return
  }
}

</mosaic_0001>

<bundles_post_ra>
// kernel: forward.1
= control target key start
LH: loop header
LB: loop body
LE: loop exit
PB: predicated region body
PF: predicated region fallthrough
CT: control target
= control target key end

     0   :  { %vm35_vm0 = vcmask 588800   ;;  %s5412_s0 = inlined_call_operand.vmem [shape: f32[16,72], index: 0, kind: input, shape index: {}]   ;;  %s5413_s1 = inlined_call_operand.vmem [shape: f32[184,128], index: 1, kind: input, shape index: {}]   ;;  %s5414_s2 = inlined_call_operand.vmem [shape: f32[2,2048], index: 2, kind: input, shape index: {}]   ;;  %s5415_s3 = inlined_call_operand.vmem [shape: bf16[2,12,2048], index: 3, kind: input, shape index: {}]   ;;  %s5416_s4 = inlined_call_operand.vmem [shape: bf16[2,12,2048], index: 4, kind: input, shape index: {}]   ;;  %s5417_s5 = inlined_call_operand.hbm [shape: f32[16,72], index: 5, kind: output, shape index: {}]  }
   0x1   :  { %v29_v0 = vld [vmem:[%s5413_s1 + $0x28] sm:$0xf]  ;;  %v28_v1 = vld [vmem:[%s5413_s1 + $0x20] sm:$0xff] }
   0x2   :  { %v22_v2 = vld [vmem:[%s5412_s0] sm:$0xff]  ;;  %4254 = vmatprep.subr.msk.mxu0 %vm35_vm0, %v29_v0 }
   0x3   :  { %4258 = vmatprep.mubr.msk.f32.mxu0 %vm35_vm0, %v22_v2 }
   0x4   :  { %10 = vsyncpa [#allocation3], 0  ;;  %4255 = vmatpush3.xpose.msk.msra.mxu0 %vm35_vm0, %v29_v0  ;;  %v23_v3 = vld [vmem:[%s5412_s0 + $0x8] sm:$0xff]  ;;  %v124_v4 = vld [vmem:[%s5413_s1 + $0x38] sm:$0xf]  ;;  %vm136_vm1 = vcmask 1043456   ;;  %v31_v6 = vlaneseq }
   0x5   :  { %4256 = vmatprep.subr.msk.mxu0 %vm35_vm0, %v28_v1  ;;  %4261 = vmatprep.subr.msk.mxu1 %vm136_vm1, %v124_v4  ;;  %v123_v5 = vld [vmem:[%s5413_s1 + $0x30] sm:$0xff]  ;;  %v4576_v9 = vld [vmem:[%s5413_s1 + $0xa0] sm:$0xff]  ;;  %vm129_vm2 = vcmask 97280   ;;  %vm229_vm3 = vcmask 48128   ;;  %s4504_s6 = smov 122   ;;  %s4505_s7 = smov 116  }
   0x6   :  { %4262 = vmatpush3.msk.msra.mxu1 %vm136_vm1, %v124_v4  ;;  %v4568_v7 = vshrl.u32 %v31_v6, 7  ;;  %v25_v27 = vld [vmem:[%s5413_s1 + $0x8] sm:$0xff]  ;;  %v24_v29 = vld [vmem:[%s5413_s1] sm:$0xff]  ;;  %vm331_vm4 = vcmask 261120   ;;  %v26_v35 = vld [vmem:[%s5413_s1 + $0x10] sm:$0xff]  ;;  %s4506_s16 = smov 104  }
   0x7   :  { %4263 = vmatprep.subr.mxu1 %v123_v5  ;;  %v27_v37 = vld [vmem:[%s5413_s1 + $0x18] sm:$0xff]  ;;  %s4507_s21 = smov 6   ;;  %vm795_vm5 = vcmask 1045504  }
   0x8   :  { %4257 = vmatpush3.xpose.msk.msra.mxu0 %vm35_vm0, %v28_v1  ;;  %4264 = vmatpush3.msra.mxu1 %v123_v5  ;;  %v4571_v8 = vsub.s32 0, %v4568_v7  ;;  %v4589_v15 = vsub.s32 1, %v4568_v7 }
   0xa   :  { %v34_v10 = vrot.slane %v4576_v9, %v4571_v8  ;;  %v128_v16 = vrot.slane %v4576_v9, %v4589_v15 }
   0xb   :  { %4259 = vmatmul.mubr.msk.f32.vlgmr.msra.gmra.mxu0 %vm35_vm0, %v23_v3 }
  0xcb   :  { %v4260_v11 = vpop.f32.mrf.mxu0 }
  0xcc   :  { %v4582_v14 = vadd.f32 %v4260_v11, %v34_v10 }
  0xcd   :  { %v114_v12 = vpop.f32.mrf.mxu0 }
  0xce   :  { %v4580_v13 = vadd.f32 %v114_v12, %v34_v10 }
  0xd0   :  { %4265 = vmatprep.mubr.msk.f32.mxu1 %vm129_vm2, %v4580_v13 }
  0xd1   :  { %4266 = vmatmul.mubr.msk.f32.vlgmr.msra.gmra.mxu1 %vm129_vm2, %v4582_v14 }
 0x191   :  { %v4267_v17 = vpop.f32.mrf.mxu1 }
 0x192   :  { %v4593_v18 = vadd.f32 %v4267_v17, %v128_v16 }
 0x193   :  { %v206_v19 = vpop.f32.mrf.mxu1 }
 0x194   :  { %v4595_v20 = vadd.f32 %v206_v19, %v128_v16  ;;  %219 = vrot.lane.b32.xlu0 %v4593_v18, %s4504_s6 }
 0x196   :  { %4276 = vmatprep.mubr.msk.f32.mxu1 %vm229_vm3, %v4595_v20 }
 0x198   :  { %217 = vrot.lane.b32.xlu0 %v4595_v20, %s4504_s6 }
 0x19c   :  { %223 = vrot.lane.b32.xlu0 %v4593_v18, %s4505_s7 }
 0x206   :  { %v220_v21 = vpop.permute.xlu0 %219 }
 0x207   :  { %227 = vrot.lane.b32.xlu1 %v220_v21, %s4505_s7 }
 0x20a   :  { %v4606_v22 = vpop.permute.xlu0 %217 }
 0x20b   :  { %225 = vrot.lane.b32.xlu1 %v4606_v22, %s4505_s7 }
 0x20e   :  { %v224_v25 = vpop.permute.xlu0 %223 }
 0x20f   :  { %221 = vrot.lane.b32.xlu1 %v4595_v20, %s4505_s7 }
 0x279   :  { %v228_v23 = vpop.permute.xlu1 %227 }
 0x27a   :  { %4268 = vmatprep.subr.msk.mxu1 %vm229_vm3, %v228_v23 }
 0x27b   :  { %4269 = vmatpush3.xpose.msk.msra.mxu1 %vm229_vm3, %v228_v23 }
 0x27d   :  { %v226_v24 = vpop.permute.xlu1 %225 }
 0x27e   :  { %4270 = vmatprep.subr.msk.mxu1 %vm229_vm3, %v226_v24 }
 0x27f   :  { %4271 = vmatpush3.xpose.msk.msra.mxu1 %vm229_vm3, %v226_v24 }
 0x280   :  { %4272 = vmatprep.subr.msk.mxu1 %vm229_vm3, %v224_v25 }
 0x281   :  { %v222_v26 = vpop.permute.xlu1 %221 }
 0x283   :  { %4273 = vmatpush3.xpose.msk.msra.mxu1 %vm229_vm3, %v224_v25 }
 0x284   :  { %4274 = vmatprep.subr.msk.mxu1 %vm229_vm3, %v222_v26 }
 0x287   :  { %4275 = vmatpush3.xpose.msk.msra.mxu1 %vm229_vm3, %v222_v26 }
 0x28a   :  { %4277 = vmatmul.mubr.msk.f32.vlgmr.msra.gmra.mxu1 %vm229_vm3, %v4593_v18 }
 0x28b   :  { %4279 = vmatprep.mubr.msk.f32.mxu1 %vm229_vm3, %v4606_v22 }
 0x28e   :  { %4280 = vmatmul.mubr.msk.f32.gmra.mxu1 %vm229_vm3, %v220_v21 }
 0x34a   :  { %v4278_v28 = vpop.f32.mrf.mxu1 }
 0x34b   :  { %v318_v30 = vadd.f32 %v4278_v28, %v25_v27 }
 0x34c   :  { %v312_v31 = vpop.f32.mrf.mxu1 }
 0x34d   :  { %v313_v32 = vadd.f32 %v312_v31, %v24_v29  ;;  %v335_v33 = vsel %vm331_vm4, %v318_v30, -inf  ;;  %v4671_v31 = vsub.s32 2, %v4568_v7 }
 0x34e   :  { %336 = vmax.xlane.f32.xlu1 %v335_v33  ;;  %v4281_v34 = vpop.f32.mrf.mxu1 }
 0x34f   :  { %v332_v36 = vsel %vm331_vm4, %v313_v32, -inf  ;;  %v328_v40 = vadd.f32 %v4281_v34, %v27_v37 }
 0x350   :  { %v322_v38 = vpop.f32.mrf.mxu1  ;;  %333 = vmax.xlane.f32.xlu0 %v332_v36 }
 0x351   :  { %v323_v39 = vadd.f32 %v322_v38, %v26_v35  ;;  %v341_v42 = vsel %vm331_vm4, %v328_v40, -inf }
 0x353   :  { %v338_v41 = vsel %vm331_vm4, %v323_v39, -inf }
 0x354   :  { %339 = vmax.xlane.f32.xlu0 %v338_v41 }
 0x358   :  { %342 = vmax.xlane.f32.xlu0 %v341_v42 }
 0x35f   :  { %382 = vrot.lane.b32.xlu1 %v220_v21, %s4506_s16  ;;  %v496_v21 = vld [vmem:[%s5413_s1 + $0x48] sm:$0xf] }
 0x3d7   :  { %v337_v43 = vpop.xlane.xlu1 %336 }
 0x3d8   :  { %v345_v44 = vsub.f32 %v318_v30, %v337_v43 }
 0x3d9   :  { %v334_v45 = vpop.xlane.xlu0 %333 }
 0x3da   :  { %v350_v46 = vmul.f32 1.442695, %v345_v44  ;;  %v344_v47 = vsub.f32 %v313_v32, %v334_v45  ;;  %v500_v32 = vrot.slane %v4576_v9, %v4671_v31 }
 0x3db   :  { %v383_v48 = vpop.permute.xlu1 %382 }
 0x3dc   :  { %4409 = vpow2.f32 %v350_v46  ;;  %v348_v49 = vmul.f32 1.442695, %v344_v47  ;;  %4282 = vmatprep.subr.mxu0 %v383_v48 }
 0x3dd   :  { %4283 = vmatpush3.msra.mxu0 %v383_v48  ;;  %v340_v50 = vpop.xlane.xlu0 %339 }
 0x3de   :  { %4411 = vpow2.f32 %v348_v49  ;;  %v346_v60 = vsub.f32 %v323_v39, %v340_v50  ;;  %v636_v50 = vld [vmem:[%s5415_s3 + $0x48] sm:$0x33] }
 0x3e0   :  { %v352_v61 = vmul.f32 1.442695, %v346_v60  ;;  %v637_v60 = vld [vmem:[%s5415_s3 + $0x50] sm:$0x33] }
 0x3e1   :  { %v343_v51 = vpop.xlane.xlu0 %342 }
 0x3e2   :  { %v347_v52 = vsub.f32 %v328_v40, %v343_v51  ;;  %v627_v51 = vld [vmem:[%s5415_s3] sm:$0xff] }
 0x3e4   :  { %v354_v53 = vmul.f32 1.442695, %v347_v52 }
 0x3e6   :  { %4413 = vpow2.f32 %v354_v53 }
 0x3e7   :  { %4415 = vpow2.f32 %v352_v61  ;;  %v4508_v61 = vmov 0  }
 0x3e8   :  { %919 = vmatprep.mubr.bf16.mxu1 %v4508_v61 }
 0x3e9   :  { %v4410_v54 = vpop.eup %4409 }
 0x3ea   :  { %v359_v55 = vsel %vm331_vm4, %v4410_v54, 0.0 }
 0x3eb   :  { %v4412_v56 = vpop.eup %4411  ;;  %360 = vadd.xlane.f32.xlu0 %v359_v55 }
 0x3ec   :  { %v356_v57 = vsel %vm331_vm4, %v4412_v56, 0.0 }
 0x3ed   :  { %357 = vadd.xlane.f32.xlu1 %v356_v57 }
 0x3f3   :  { %v4414_v58 = vpop.eup %4413 }
 0x3f4   :  { %v365_v59 = vsel %vm331_vm4, %v4414_v58, 0.0  ;;  %v4416_v62 = vpop.eup %4415 }
 0x3f5   :  { %366 = vadd.xlane.f32.xlu0 %v365_v59  ;;  %v362_v63 = vsel %vm331_vm4, %v4416_v62, 0.0  ;;  %v629_v59 = vld [vmem:[%s5415_s3 + $0x10] sm:$0xff] }
 0x3fe   :  { %378 = vrot.lane.b32.xlu1 %v4593_v18, %s4506_s16 }
 0x40b   :  { %380 = vrot.lane.b32.xlu0 %v4606_v22, %s4506_s16  ;;  %v495_v22 = vld [vmem:[%s5413_s1 + $0x40] sm:$0xff] }
 0x422   :  { %363 = vadd.xlane.f32.xlu1 %v362_v63  ;;  %v4002_v63 = vcombine.low %v629_v59, %v637_v60 }
 0x433   :  { %376 = vrot.lane.b32.xlu1 %v4595_v20, %s4506_s16 }
 0x474   :  { %v361_v1 = vpop.xlane.xlu0 %360 }
 0x476   :  { %v358_v0 = vpop.xlane.xlu1 %357 }
 0x477   :  { %4417 = vrcp.f32 %v358_v0  ;;  %v630_v0 = vld [vmem:[%s5415_s3 + $0x18] sm:$0xff] }
 0x478   :  { %4419 = vrcp.f32 %v361_v1  ;;  %v638_v1 = vld [vmem:[%s5415_s3 + $0x58] sm:$0x33] }
 0x47a   :  { %v379_v5 = vpop.permute.xlu1 %378 }
 0x47e   :  { %v367_v2 = vpop.xlane.xlu0 %366 }
 0x47f   :  { %4421 = vrcp.f32 %v367_v2  ;;  %v4005_v2 = vcombine.high %v630_v0, %v638_v1 }
 0x482   :  { %v381_v3 = vpop.permute.xlu0 %380 }
 0x483   :  { %4284 = vmatprep.subr.mxu0 %v381_v3 }
 0x484   :  { %v4418_v4 = vpop.eup %4417  ;;  %4285 = vmatpush3.msra.mxu0 %v381_v3  ;;  %v4004_v3 = vcombine.low %v630_v0, %v638_v1 }
 0x485   :  { %4286 = vmatprep.subr.mxu0 %v379_v5  ;;  %v372_v6 = vmul.f32 %v4418_v4, %v4412_v56  ;;  %v4420_v11 = vpop.eup %4419 }
 0x486   :  { %4287 = vmatpush3.msra.mxu0 %v379_v5  ;;  %v373_v16 = vmul.f32 %v4420_v11, %v4410_v54  ;;  %v635_v54 = vld [vmem:[%s5415_s3 + $0x40] sm:$0x33] }
 0x487   :  { %4290 = vmatprep.mubr.msk.f32.mxu0 %vm331_vm4, %v372_v6  ;;  %v3999_v55 = vcombine.high %v627_v51, %v635_v54  ;;  %v3998_v56 = vcombine.low %v627_v51, %v635_v54  ;;  %v1244_v51 = vld [vmem:[%s5416_s4 + $0x40] sm:$0x33]  ;;  %v1245_v54 = vld [vmem:[%s5416_s4 + $0x48] sm:$0x33] }
 0x48c   :  { %v4422_v17 = vpop.eup %4421 }
 0x48d   :  { %v375_v20 = vmul.f32 %v4422_v17, %v4414_v58  ;;  %v797_v58 = vsel %vm795_vm5, %v3998_v56, 0 }
 0x4ab   :  { %v364_v10 = vpop.xlane.xlu1 %363 }
 0x4ac   :  { %4423 = vrcp.f32 %v364_v10 }
 0x4af   :  { %v377_v12 = vpop.permute.xlu1 %376 }
 0x4b0   :  { %4288 = vmatprep.subr.mxu0 %v377_v12 }
 0x4b1   :  { %4289 = vmatpush3.msra.mxu0 %v377_v12 }
 0x4b2   :  { %4291 = vmatmul.mubr.msk.f32.vlgmr.msra.gmra.mxu0 %vm331_vm4, %v373_v16  ;;  %4296 = vmatprep.subr.msk.mxu0 %vm136_vm1, %v496_v21  ;;  %v4714_v16 = vsub.s32 3, %v4568_v7 }
 0x4b3   :  { %4297 = vmatpush3.msk.msra.mxu0 %vm136_vm1, %v496_v21 }
 0x4b4   :  { %4298 = vmatprep.subr.mxu0 %v495_v22 }
 0x4b5   :  { %4299 = vmatpush3.msra.mxu0 %v495_v22 }
 0x4b6   :  { %4014 = vmatprep.subr.msk.bf16.mxu0 %vm795_vm5, %v3999_v55 }
 0x4b9   :  { %v4424_v18 = vpop.eup %4423 }
 0x4ba   :  { %v374_v19 = vmul.f32 %v4424_v18, %v4416_v62  ;;  %v4003_v62 = vcombine.high %v629_v59, %v637_v60  ;;  %v617_v18 = vrot.slane %v4576_v9, %v4714_v16  ;;  %v4797_v59 = vld [vmem:[%s5416_s4 + $0x50] sm:$0x33]  ;;  %v4802_v60 = vld [vmem:[%s5416_s4 + $0x18] sm:$0xff] }
 0x4bc   :  { %4293 = vmatprep.mubr.msk.f32.mxu0 %vm331_vm4, %v374_v19  ;;  %v4719_v19 = vsub.s32 4, %v4568_v7 }
 0x4bd   :  { %4294 = vmatmul.mubr.msk.f32.gmra.mxu0 %vm331_vm4, %v375_v20 }
 0x4be   :  { %v623_v22 = vrot.slane %v4576_v9, %v4719_v19 }
 0x572   :  { %v4292_v23 = vpop.f32.mrf.mxu0 }
 0x574   :  { %v466_v24 = vpop.f32.mrf.mxu0 }
 0x57d   :  { %v4295_v25 = vpop.f32.mrf.mxu0 }
 0x57e   :  { %489 = vrot.lane.b32.xlu1 %v4295_v25, %s4507_s21 }
 0x57f   :  { %v476_v26 = vpop.f32.mrf.mxu0 }
 0x580   :  { %487 = vrot.lane.b32.xlu0 %v476_v26, %s4507_s21  ;;  %v631_v26 = vld [vmem:[%s5415_s3 + $0x20] sm:$0xff] }
 0x5f0   :  { %v490_v27 = vpop.permute.xlu1 %489 }
 0x5f1   :  { %v494_v30 = vsel %vm229_vm3, %v4292_v23, %v490_v27 }
 0x5f2   :  { %v488_v28 = vpop.permute.xlu0 %487 }
 0x5f3   :  { %v493_v29 = vsel %vm229_vm3, %v466_v24, %v488_v28 }
 0x5f4   :  { %4300 = vmatprep.mubr.msk.f32.mxu0 %vm129_vm2, %v493_v29  ;;  %v639_v29 = vld [vmem:[%s5415_s3 + $0x60] sm:$0x33] }
 0x5f5   :  { %4301 = vmatmul.mubr.msk.f32.vlgmr.msra.gmra.mxu0 %vm129_vm2, %v494_v30  ;;  %v632_v30 = vld [vmem:[%s5415_s3 + $0x28] sm:$0xff] }
 0x5f6   :  { %859 = vmatpush1.bf16.msra.mxu0 %v797_v58  ;;  %876 = vmatprep.mubr.bf16.mxu0 %v4508_v61  ;;  %v4792_v58 = vld [vmem:[%s5416_s4 + $0x10] sm:$0xff] }
 0x5f7   :  { %4018 = vmatprep.subr.msk.bf16.mxu0 %vm795_vm5, %v4003_v62  ;;  %v4035_v62 = vcombine.high %v4792_v58, %v4797_v59  ;;  %v4034_v0 = vcombine.low %v4792_v58, %v4797_v59  ;;  %v4881_v58 = vld [vmem:[%s5416_s4 + $0x30] sm:$0xff] }
 0x5f8   :  { %v4886_v59 = vld [vmem:[%s5416_s4 + $0x70] sm:$0x33] }
 0x6b5   :  { %v4302_v33 = vpop.f32.mrf.mxu0 }
 0x6b6   :  { %v582_v34 = vadd.f32 %v4302_v33, %v500_v32 }
 0x6b7   :  { %v576_v35 = vpop.f32.mrf.mxu0 }
 0x6b8   :  { %v577_v36 = vadd.f32 %v576_v35, %v500_v32  ;;  %v586_v37 = vadd.f32 %v582_v34, %v4582_v14  ;;  %v640_v32 = vld [vmem:[%s5415_s3 + $0x68] sm:$0x33]  ;;  %v809_v34 = vsel %vm795_vm5, %v4002_v63, 0  ;;  %v815_v35 = vsel %vm795_vm5, %v4004_v3, 0  ;;  %v4809_v63 = vld [vmem:[%s5416_s4 + $0x58] sm:$0x33] }
 0x6b9   :  { %v4036_v1 = vcombine.low %v4802_v60, %v4809_v63  ;;  %v643_v3 = vld [vmem:[%s5414_s2] ss:$2 sm:$0xff] }
 0x6ba   :  { %v590_v38 = vsel %vm129_vm2, %v586_v37, 0.0  ;;  %v585_v39 = vadd.f32 %v577_v36, %v4580_v13  ;;  %v628_v13 = vld [vmem:[%s5415_s3 + $0x8] sm:$0xff]  ;;  %v4007_v36 = vcombine.high %v631_v26, %v639_v29 }
 0x6bb   :  { %591 = vadd.xlane.f32.xlu1 %v590_v38  ;;  %v4001_v52 = vcombine.high %v628_v13, %v636_v50  ;;  %v4000_v53 = vcombine.low %v628_v13, %v636_v50  ;;  %v4006_v38 = vcombine.low %v631_v26, %v639_v29  ;;  %v1236_v50 = vld [vmem:[%s5416_s4] sm:$0xff] }
 0x6bc   :  { %v587_v40 = vsel %vm129_vm2, %v585_v39, 0.0  ;;  %v4030_v55 = vcombine.low %v1236_v50, %v1244_v51 }
 0x6bd   :  { %588 = vadd.xlane.f32.xlu0 %v587_v40  ;;  %4016 = vmatprep.subr.msk.bf16.mxu1 %vm795_vm5, %v4001_v52  ;;  %v803_v57 = vsel %vm795_vm5, %v4000_v53, 0  ;;  %v633_v40 = vld [vmem:[%s5415_s3 + $0x30] sm:$0xff]  ;;  %v1237_v52 = vld [vmem:[%s5416_s4 + $0x8] sm:$0xff]  ;;  %v4031_v53 = vcombine.high %v1236_v50, %v1244_v51  ;;  %v667_v51 = vrot.slane %v643_v3, %v4719_v19 }
 0x6be   :  { %902 = vmatpush1.bf16.msra.mxu1 %v803_v57  ;;  %v4032_v56 = vcombine.low %v1237_v52, %v1245_v54  ;;  %v4033_v57 = vcombine.high %v1237_v52, %v1245_v54 }
 0x6bf   :  { %4020 = vmatprep.subr.msk.bf16.mxu1 %vm795_vm5, %v4005_v2  ;;  %v4037_v2 = vcombine.high %v4802_v60, %v4809_v63  ;;  %v4891_v60 = vld [vmem:[%s5416_s4 + $0x38] sm:$0xff] }
 0x744   :  { %v592_v41 = vpop.xlane.xlu1 %591 }
 0x745   :  { %v595_v42 = vmul.f32 0.083333336, %v592_v41  ;;  %v641_v41 = vld [vmem:[%s5415_s3 + $0x70] sm:$0x33] }
 0x746   :  { %v589_v43 = vpop.xlane.xlu0 %588 }
 0x747   :  { %v594_v44 = vmul.f32 0.083333336, %v589_v43  ;;  %v597_v45 = vsub.f32 %v586_v37, %v595_v42  ;;  %v4009_v37 = vcombine.high %v632_v30, %v640_v32  ;;  %v634_v42 = vld [vmem:[%s5415_s3 + $0x38] sm:$0xff] }
 0x748   :  { %v642_v43 = vld [vmem:[%s5415_s3 + $0x78] sm:$0x33] }
 0x749   :  { %v596_v46 = vsub.f32 %v585_v39, %v594_v44  ;;  %v599_v49 = vmul.f32 %v597_v45, %v597_v45  ;;  %v4008_v39 = vcombine.low %v632_v30, %v640_v32  ;;  %v821_v44 = vsel %vm795_vm5, %v4006_v38, 0 }
 0x74b   :  { %v598_v47 = vmul.f32 %v596_v46, %v596_v46  ;;  %v603_v14 = vsel %vm129_vm2, %v599_v49, 0.0  ;;  %v4012_v49 = vcombine.low %v634_v42, %v642_v43 }
 0x74d   :  { %v600_v48 = vsel %vm129_vm2, %v598_v47, 0.0  ;;  %v4013_v47 = vcombine.high %v634_v42, %v642_v43  ;;  %v839_v13 = vsel %vm795_vm5, %v4012_v49, 0 }
 0x74e   :  { %601 = vadd.xlane.f32.xlu0 %v600_v48  ;;  %v4010_v48 = vcombine.low %v633_v40, %v641_v41 }
 0x752   :  { %604 = vadd.xlane.f32.xlu0 %v603_v14  ;;  %v833_v14 = vsel %vm795_vm5, %v4010_v48, 0 }
 0x7d7   :  { %v602_v4 = vpop.xlane.xlu0 %601 }
 0x7d8   :  { %v606_v5 = vmul.f32 0.083333336, %v602_v4 }
 0x7da   :  { %v608_v6 = vadd.f32 1e-05, %v606_v5 }
 0x7db   :  { %v605_v10 = vpop.xlane.xlu0 %604 }
 0x7dc   :  { %4425 = vrsqrt.f32 %v608_v6  ;;  %v607_v11 = vmul.f32 0.083333336, %v605_v10  ;;  %v655_v6 = vrot.slane %v643_v3, %v4589_v15  ;;  %v663_v10 = vrot.slane %v643_v3, %v4714_v16 }
 0x7de   :  { %v609_v12 = vadd.f32 1e-05, %v607_v11  ;;  %v651_v11 = vrot.slane %v643_v3, %v4571_v8 }
 0x7e0   :  { %4427 = vrsqrt.f32 %v609_v12  ;;  %v659_v12 = vrot.slane %v643_v3, %v4671_v31 }
 0x7e9   :  { %v4426_v17 = vpop.eup %4425 }
 0x7ea   :  { %v612_v20 = vmul.f32 %v4426_v17, %v596_v46  ;;  %v4011_v46 = vcombine.high %v633_v40, %v641_v41 }
 0x7ec   :  { %v618_v23 = vmul.f32 %v617_v18, %v612_v20 }
 0x7ed   :  { %v4428_v21 = vpop.eup %4427 }
 0x7ee   :  { %v613_v24 = vmul.f32 %v4428_v21, %v597_v45  ;;  %v4726_v27 = vadd.f32 %v623_v22, %v618_v23  ;;  %v827_v45 = vsel %vm795_vm5, %v4008_v39, 0  ;;  %v4828_v23 = vsub.s32 7, %v4568_v7 }
 0x7f0   :  { %v619_v25 = vmul.f32 %v617_v18, %v613_v24  ;;  %v679_v43 = vrot.slane %v643_v3, %v4828_v23 }
 0x7f2   :  { %v4728_v28 = vadd.f32 %v623_v22, %v619_v25  ;;  %v4825_v22 = vsub.s32 5, %v4568_v7 }
 0x7f4   :  { %v626_v33 = vpack.c.bf16 %v4728_v28, %v4726_v27  ;;  %v671_v42 = vrot.slane %v643_v3, %v4825_v22 }
 0x7f6   :  { %4015 = vmatmul.mubr.msk.bf16.vlgmr.msra.gmra.mxu0 %vm129_vm2, %v626_v33  ;;  %4017 = vmatmul.mubr.msk.bf16.vlgmr.msra.gmra.mxu1 %vm129_vm2, %v626_v33 }
 0x7f7   :  { %945 = vmatpush1.bf16.msra.mxu0 %v809_v34  ;;  %988 = vmatpush1.bf16.msra.mxu1 %v815_v35  ;;  %v4831_v35 = vsub.s32 6, %v4568_v7  ;;  %v4843_v7 = vld [vmem:[%s5416_s4 + $0x60] sm:$0x33] }
 0x7f8   :  { %962 = vmatprep.mubr.bf16.mxu0 %v4508_v61  ;;  %1005 = vmatprep.mubr.bf16.mxu1 %v4508_v61 }
 0x7f9   :  { %4022 = vmatprep.subr.msk.bf16.mxu0 %vm795_vm5, %v4007_v36  ;;  %4024 = vmatprep.subr.msk.bf16.mxu1 %vm795_vm5, %v4009_v37  ;;  %v675_v52 = vrot.slane %v643_v3, %v4831_v35 }
 0x7fe   :  { %4019 = vmatmul.mubr.msk.bf16.vlgmr.msra.gmra.mxu0 %vm129_vm2, %v626_v33  ;;  %4021 = vmatmul.mubr.msk.bf16.vlgmr.msra.gmra.mxu1 %vm129_vm2, %v626_v33 }
 0x7ff   :  { %1031 = vmatpush1.bf16.msra.mxu0 %v821_v44  ;;  %1074 = vmatpush1.bf16.msra.mxu1 %v827_v45  ;;  %v4838_v44 = vld [vmem:[%s5416_s4 + $0x20] sm:$0xff]  ;;  %v4848_v45 = vld [vmem:[%s5416_s4 + $0x28] sm:$0xff] }
 0x800   :  { %1048 = vmatprep.mubr.bf16.mxu0 %v4508_v61  ;;  %1091 = vmatprep.mubr.bf16.mxu1 %v4508_v61 }
 0x801   :  { %4026 = vmatprep.subr.msk.bf16.mxu0 %vm795_vm5, %v4011_v46  ;;  %4028 = vmatprep.subr.msk.bf16.mxu1 %vm795_vm5, %v4013_v47 }
 0x806   :  { %4023 = vmatmul.mubr.msk.bf16.vlgmr.msra.gmra.mxu0 %vm129_vm2, %v626_v33  ;;  %4025 = vmatmul.mubr.msk.bf16.vlgmr.msra.gmra.mxu1 %vm129_vm2, %v626_v33 }
 0x807   :  { %1117 = vmatpush1.bf16.msra.mxu0 %v833_v14  ;;  %1160 = vmatpush1.bf16.msra.mxu1 %v839_v13  ;;  %v4853_v14 = vld [vmem:[%s5416_s4 + $0x68] sm:$0x33] }
 0x808   :  { %1134 = vmatprep.mubr.bf16.mxu0 %v4508_v61  ;;  %1177 = vmatprep.mubr.bf16.mxu1 %v4508_v61  ;;  %v4041_v3 = vcombine.high %v4848_v45, %v4853_v14 }
 0x809   :  { %1350 = vmatprep.subr.bf16.mxu0 %v4031_v53  ;;  %1391 = vmatprep.subr.bf16.mxu1 %v4033_v57  ;;  %v4039_v57 = vcombine.high %v4838_v44, %v4843_v7 }
 0x80e   :  { %4027 = vmatmul.mubr.msk.bf16.vlgmr.msra.gmra.mxu0 %vm129_vm2, %v626_v33  ;;  %4029 = vmatmul.mubr.msk.bf16.vlgmr.msra.gmra.mxu1 %vm129_vm2, %v626_v33 }
 0x80f   :  { %1351 = vmatpush1.bf16.xpose.msra.mxu0 %v4030_v55  ;;  %1392 = vmatpush1.bf16.xpose.msra.mxu1 %v4032_v56 }
 0x810   :  { %1432 = vmatprep.subr.bf16.mxu0 %v4035_v62  ;;  %1473 = vmatprep.subr.bf16.mxu1 %v4037_v2 }
 0x8b6   :  { %v878_v4 = vpop.f32.mrf.mxu0  ;;  %v921_v5 = vpop.f32.mrf.mxu1 }
 0x8b7   :  { %v879_v30 = vadd.f32 %v878_v4, %v651_v11  ;;  %v922_v32 = vadd.f32 %v921_v5, %v659_v12 }
 0x8b8   :  { %v880_v17 = vpop.f32.mrf.mxu0  ;;  %v923_v18 = vpop.f32.mrf.mxu1 }
 0x8b9   :  { %v881_v24 = vadd.f32 %v880_v17, %v655_v6  ;;  %v924_v25 = vadd.f32 %v923_v18, %v663_v10  ;;  %v1188_v13 = vmax.f32 %v879_v30, 0.0  ;;  %v1190_v50 = vmax.f32 %v922_v32, 0.0 }
 0x8ba   :  { %v882_v20 = vpop.f32.mrf.mxu0  ;;  %v925_v21 = vpop.f32.mrf.mxu1 }
 0x8bb   :  { %v883_v26 = vadd.f32 %v882_v20, %v651_v11  ;;  %v926_v29 = vadd.f32 %v925_v21, %v659_v12  ;;  %v1189_v46 = vmax.f32 %v881_v24, 0.0  ;;  %v1191_v47 = vmax.f32 %v924_v25, 0.0 }
 0x8bc   :  { %v884_v33 = vpop.f32.mrf.mxu0  ;;  %v927_v34 = vpop.f32.mrf.mxu1 }
 0x8bd   :  { %v885_v36 = vadd.f32 %v884_v33, %v655_v6  ;;  %v928_v37 = vadd.f32 %v927_v34, %v663_v10  ;;  %v1204_v38 = vmax.f32 %v883_v26, 0.0  ;;  %v1206_v39 = vmax.f32 %v926_v29, 0.0  ;;  %v4862_v10 = vld [vmem:[%s5414_s2 + $0x10] ss:$2 sm:$0xff] }
 0x8be   :  { %v964_v40 = vpop.f32.mrf.mxu0  ;;  %v1007_v41 = vpop.f32.mrf.mxu1  ;;  %v683_v29 = vrot.slane %v4862_v10, %v4571_v8 }
 0x8bf   :  { %v1205_v48 = vmax.f32 %v885_v36, 0.0  ;;  %v1207_v49 = vmax.f32 %v928_v37, 0.0  ;;  %v1220_v62 = vpack.c.bf16 %v1204_v38, %v1188_v13  ;;  %v1222_v2 = vpack.c.bf16 %v1206_v39, %v1190_v50  ;;  %v4896_v39 = vld [vmem:[%s5416_s4 + $0x78] sm:$0x33] }
 0x8c0   :  { %v966_v53 = vpop.f32.mrf.mxu0  ;;  %v1009_v54 = vpop.f32.mrf.mxu1  ;;  %v965_v18 = vadd.f32 %v964_v40, %v667_v51  ;;  %v1008_v20 = vadd.f32 %v1007_v41, %v675_v52  ;;  %v687_v36 = vrot.slane %v4862_v10, %v4589_v15  ;;  %v695_v37 = vrot.slane %v4862_v10, %v4714_v16 }
 0x8c1   :  { %v1221_v55 = vpack.c.bf16 %v1205_v48, %v1189_v46  ;;  %v1223_v56 = vpack.c.bf16 %v1207_v49, %v1191_v47  ;;  %v967_v4 = vadd.f32 %v966_v53, %v671_v42  ;;  %v1010_v11 = vadd.f32 %v1009_v54, %v679_v43 }
 0x8c2   :  { %v968_v5 = vpop.f32.mrf.mxu0  ;;  %v1011_v6 = vpop.f32.mrf.mxu1  ;;  %v1192_v40 = vmax.f32 %v965_v18, 0.0  ;;  %v1194_v41 = vmax.f32 %v1008_v20, 0.0  ;;  %v4038_v47 = vcombine.low %v4838_v44, %v4843_v7  ;;  %v4040_v13 = vcombine.low %v4848_v45, %v4853_v14 }
 0x8c3   :  { %v969_v12 = vadd.f32 %v968_v5, %v667_v51  ;;  %v1012_v17 = vadd.f32 %v1011_v6, %v675_v52  ;;  %1368 = vmatprep.mubr.bf16.mxu0 %v1221_v55  ;;  %1409 = vmatprep.mubr.bf16.mxu1 %v1223_v56  ;;  %v1193_v63 = vmax.f32 %v967_v4, 0.0  ;;  %v4043_v50 = vcombine.high %v4881_v58, %v4886_v59 }
 0x8c4   :  { %v970_v21 = vpop.f32.mrf.mxu0  ;;  %v1013_v24 = vpop.f32.mrf.mxu1  ;;  %1369 = vmatmul.mubr.bf16.vlgmr.msra.gmra.mxu0 %v1220_v62  ;;  %1410 = vmatmul.mubr.bf16.vlgmr.msra.gmra.mxu1 %v1222_v2  ;;  %v4045_v56 = vcombine.high %v4891_v60, %v4896_v39  ;;  %v711_v18 = vrot.slane %v4862_v10, %v4828_v23 }
 0x8c5   :  { %v971_v25 = vadd.f32 %v970_v21, %v671_v42  ;;  %v1014_v26 = vadd.f32 %v1013_v24, %v679_v43  ;;  %1433 = vmatpush1.bf16.xpose.msra.mxu0 %v4034_v0  ;;  %1474 = vmatpush1.bf16.xpose.msra.mxu1 %v4036_v1  ;;  %v1208_v30 = vmax.f32 %v969_v12, 0.0  ;;  %v1210_v32 = vmax.f32 %v1012_v17, 0.0 }
 0x8c6   :  { %v1050_v33 = vpop.f32.mrf.mxu0  ;;  %v1093_v34 = vpop.f32.mrf.mxu1  ;;  %1514 = vmatprep.subr.bf16.mxu0 %v4039_v57  ;;  %1555 = vmatprep.subr.bf16.mxu1 %v4041_v3  ;;  %v1195_v0 = vmax.f32 %v1010_v11, 0.0  ;;  %v691_v42 = vrot.slane %v4862_v10, %v4671_v31  ;;  %v703_v17 = vrot.slane %v4862_v10, %v4825_v22 }
 0x8c7   :  { %v1209_v1 = vmax.f32 %v971_v25, 0.0  ;;  %v1211_v38 = vmax.f32 %v1014_v26, 0.0  ;;  %v1224_v51 = vpack.c.bf16 %v1208_v30, %v1192_v40  ;;  %v1226_v52 = vpack.c.bf16 %v1210_v32, %v1194_v41 }
 0x8c8   :  { %v1052_v43 = vpop.f32.mrf.mxu0  ;;  %v1095_v46 = vpop.f32.mrf.mxu1  ;;  %v1051_v44 = vadd.f32 %v1050_v33, %v683_v29  ;;  %v1094_v7 = vadd.f32 %v1093_v34, %v691_v42  ;;  %v699_v30 = vrot.slane %v4862_v10, %v4719_v19  ;;  %v707_v32 = vrot.slane %v4862_v10, %v4831_v35 }
 0x8c9   :  { %v1225_v48 = vpack.c.bf16 %v1209_v1, %v1193_v63  ;;  %v1227_v49 = vpack.c.bf16 %v1211_v38, %v1195_v0  ;;  %v1053_v53 = vadd.f32 %v1052_v43, %v687_v36  ;;  %v1096_v57 = vadd.f32 %v1095_v46, %v695_v37 }
 0x8ca   :  { %v1054_v54 = vpop.f32.mrf.mxu0  ;;  %v1097_v55 = vpop.f32.mrf.mxu1  ;;  %v1196_v26 = vmax.f32 %v1051_v44, 0.0  ;;  %v4042_v63 = vcombine.low %v4881_v58, %v4886_v59  ;;  %v4044_v0 = vcombine.low %v4891_v60, %v4896_v39 }
 0x8cb   :  { %v1055_v62 = vadd.f32 %v1054_v54, %v683_v29  ;;  %v1098_v2 = vadd.f32 %v1097_v55, %v691_v42  ;;  %1450 = vmatprep.mubr.bf16.mxu0 %v1225_v48  ;;  %1491 = vmatprep.mubr.bf16.mxu1 %v1227_v49  ;;  %v1197_v20 = vmax.f32 %v1053_v53, 0.0  ;;  %v1199_v21 = vmax.f32 %v1096_v57, 0.0 }
 0x8cc   :  { %v1056_v4 = vpop.f32.mrf.mxu0  ;;  %v1099_v45 = vpop.f32.mrf.mxu1  ;;  %1451 = vmatmul.mubr.bf16.vlgmr.msra.gmra.mxu0 %v1224_v51  ;;  %1492 = vmatmul.mubr.bf16.vlgmr.msra.gmra.mxu1 %v1226_v52  ;;  %v1198_v29 = vmax.f32 %v1094_v7, 0.0 }
 0x8cd   :  { %v1057_v14 = vadd.f32 %v1056_v4, %v687_v36  ;;  %v1100_v5 = vadd.f32 %v1099_v45, %v695_v37  ;;  %1515 = vmatpush1.bf16.xpose.msra.mxu0 %v4038_v47  ;;  %1556 = vmatpush1.bf16.xpose.msra.mxu1 %v4040_v13  ;;  %v1212_v6 = vmax.f32 %v1055_v62, 0.0  ;;  %v1214_v3 = vmax.f32 %v1098_v2, 0.0 }
 0x8ce   :  { %v1136_v11 = vpop.f32.mrf.mxu0  ;;  %v1179_v12 = vpop.f32.mrf.mxu1  ;;  %1596 = vmatprep.subr.bf16.mxu0 %v4043_v50  ;;  %1637 = vmatprep.subr.bf16.mxu1 %v4045_v56 }
 0x8cf   :  { %v1213_v24 = vmax.f32 %v1057_v14, 0.0  ;;  %v1215_v25 = vmax.f32 %v1100_v5, 0.0  ;;  %v1228_v1 = vpack.c.bf16 %v1212_v6, %v1196_v26  ;;  %v1230_v38 = vpack.c.bf16 %v1214_v3, %v1198_v29 }
 0x8d0   :  { %v1138_v33 = vpop.f32.mrf.mxu0  ;;  %v1181_v34 = vpop.f32.mrf.mxu1  ;;  %v1137_v10 = vadd.f32 %v1136_v11, %v699_v30  ;;  %v1180_v48 = vadd.f32 %v1179_v12, %v707_v32  ;;  %v1255_v14 = vrot.slane %v4576_v9, %v4825_v22 }
 0x8d1   :  { %v1229_v36 = vpack.c.bf16 %v1213_v24, %v1197_v20  ;;  %v1231_v37 = vpack.c.bf16 %v1215_v25, %v1199_v21  ;;  %v1139_v40 = vadd.f32 %v1138_v33, %v703_v17  ;;  %v1182_v43 = vadd.f32 %v1181_v34, %v711_v18 }
 0x8d2   :  { %v1140_v41 = vpop.f32.mrf.mxu0  ;;  %v1183_v42 = vpop.f32.mrf.mxu1  ;;  %v1200_v54 = vmax.f32 %v1137_v10, 0.0  ;;  %v1202_v55 = vmax.f32 %v1180_v48, 0.0 }
 0x8d3   :  { %v1141_v46 = vadd.f32 %v1140_v41, %v699_v30  ;;  %v1184_v47 = vadd.f32 %v1183_v42, %v707_v32  ;;  %1532 = vmatprep.mubr.bf16.mxu0 %v1229_v36  ;;  %1573 = vmatprep.mubr.bf16.mxu1 %v1231_v37  ;;  %v1201_v50 = vmax.f32 %v1139_v40, 0.0  ;;  %v1203_v51 = vmax.f32 %v1182_v43, 0.0 }
 0x8d4   :  { %v1142_v49 = vpop.f32.mrf.mxu0  ;;  %v1185_v13 = vpop.f32.mrf.mxu1  ;;  %1533 = vmatmul.mubr.bf16.vlgmr.msra.gmra.mxu0 %v1228_v1  ;;  %1574 = vmatmul.mubr.bf16.vlgmr.msra.gmra.mxu1 %v1230_v38 }
 0x8d5   :  { %v1143_v58 = vadd.f32 %v1142_v49, %v703_v17  ;;  %v1186_v59 = vadd.f32 %v1185_v13, %v711_v18  ;;  %1597 = vmatpush1.bf16.xpose.msra.mxu0 %v4042_v63  ;;  %1638 = vmatpush1.bf16.xpose.msra.mxu1 %v4044_v0  ;;  %v1216_v60 = vmax.f32 %v1141_v46, 0.0  ;;  %v1218_v39 = vmax.f32 %v1184_v47, 0.0 }
 0x8d7   :  { %v1217_v52 = vmax.f32 %v1143_v58, 0.0  ;;  %v1219_v53 = vmax.f32 %v1186_v59, 0.0  ;;  %v1232_v62 = vpack.c.bf16 %v1216_v60, %v1200_v54  ;;  %v1234_v2 = vpack.c.bf16 %v1218_v39, %v1202_v55 }
 0x8d9   :  { %v1233_v56 = vpack.c.bf16 %v1217_v52, %v1201_v50  ;;  %v1235_v57 = vpack.c.bf16 %v1219_v53, %v1203_v51 }
 0x8db   :  { %1614 = vmatprep.mubr.bf16.mxu0 %v1233_v56  ;;  %1655 = vmatprep.mubr.bf16.mxu1 %v1235_v57 }
 0x8dc   :  { %1615 = vmatmul.mubr.bf16.vlgmr.msra.gmra.mxu0 %v1232_v62  ;;  %1656 = vmatmul.mubr.bf16.vlgmr.msra.gmra.mxu1 %v1234_v2 }
 0x984   :  { %v1370_v44 = vpop.f32.mrf.mxu0  ;;  %v1411_v7 = vpop.f32.mrf.mxu1 }
 0x985   :  { %v1371_v12 = vadd.f32 %v1370_v44, %v1255_v14 }
 0x986   :  { %v1372_v4 = vpop.f32.mrf.mxu0  ;;  %v1413_v45 = vpop.f32.mrf.mxu1 }
 0x987   :  { %v1412_v24 = vadd.f32 %v1411_v7, %v1371_v12  ;;  %v1704_v12 = vld [vmem:[%s5413_s1 + $0x50] sm:$0xff] }
 0x988   :  { %v1373_v5 = vpop.f32.mrf.mxu0  ;;  %v1414_v6 = vpop.f32.mrf.mxu1 }
 0x989   :  { %v1374_v25 = vadd.f32 %v1373_v5, %v1255_v14 }
 0x98a   :  { %v1375_v3 = vpop.f32.mrf.mxu0  ;;  %v1416_v11 = vpop.f32.mrf.mxu1 }
 0x98b   :  { %v1415_v34 = vadd.f32 %v1414_v6, %v1374_v25 }
 0x98c   :  { %v1452_v17 = vpop.f32.mrf.mxu0  ;;  %v1493_v18 = vpop.f32.mrf.mxu1 }
 0x98d   :  { %v1453_v30 = vadd.f32 %v1452_v17, %v1412_v24 }
 0x98e   :  { %v1454_v20 = vpop.f32.mrf.mxu0  ;;  %v1495_v21 = vpop.f32.mrf.mxu1 }
 0x98f   :  { %v1494_v9 = vadd.f32 %v1493_v18, %v1453_v30 }
 0x990   :  { %v1455_v26 = vpop.f32.mrf.mxu0  ;;  %v1496_v29 = vpop.f32.mrf.mxu1 }
 0x991   :  { %v1456_v63 = vadd.f32 %v1455_v26, %v1415_v34  ;;  %v4477_v26 = vld [vmem:[%s5413_s1 + $0xa0] sm:$0xff] }
 0x992   :  { %v1457_v32 = vpop.f32.mrf.mxu0  ;;  %v1498_v33 = vpop.f32.mrf.mxu1 }
 0x993   :  { %v1497_v42 = vadd.f32 %v1496_v29, %v1456_v63  ;;  %v1695_v29 = vrot.slane %v4477_v26, %v4831_v35  ;;  %v1701_v33 = vrot.slane %v4477_v26, %v4828_v23 }
 0x994   :  { %v1534_v36 = vpop.f32.mrf.mxu0  ;;  %v1575_v37 = vpop.f32.mrf.mxu1 }
 0x995   :  { %v1535_v38 = vadd.f32 %v1534_v36, %v1494_v9 }
 0x996   :  { %v1536_v0 = vpop.f32.mrf.mxu0  ;;  %v1577_v1 = vpop.f32.mrf.mxu1 }
 0x997   :  { %v1576_v47 = vadd.f32 %v1575_v37, %v1535_v38  ;;  %v4952_v1 = vld [vmem:[%s5413_s1 + $0xa8] sm:$0xff] }
 0x998   :  { %v1537_v40 = vpop.f32.mrf.mxu0  ;;  %v1578_v41 = vpop.f32.mrf.mxu1  ;;  %v1710_v38 = vrot.slane %v4952_v1, %v4571_v8 }
 0x999   :  { %v1538_v10 = vadd.f32 %v1537_v40, %v1497_v42 }
 0x99a   :  { %v1539_v43 = vpop.f32.mrf.mxu0  ;;  %v1580_v46 = vpop.f32.mrf.mxu1 }
 0x99b   :  { %v1579_v60 = vadd.f32 %v1578_v41, %v1538_v10 }
 0x99c   :  { %v1616_v48 = vpop.f32.mrf.mxu0  ;;  %v1657_v49 = vpop.f32.mrf.mxu1 }
 0x99d   :  { %v1617_v13 = vadd.f32 %v1616_v48, %v1576_v47 }
 0x99e   :  { %v1618_v58 = vpop.f32.mrf.mxu0  ;;  %v1659_v59 = vpop.f32.mrf.mxu1 }
 0x99f   :  { %v1658_v39 = vadd.f32 %v1657_v49, %v1617_v13  ;;  %v4991_v59 = vld [vmem:[%s5413_s1 + $0x8] sm:$0xff] }
 0x9a0   :  { %v1619_v50 = vpop.f32.mrf.mxu0  ;;  %v1660_v51 = vpop.f32.mrf.mxu1 }
 0x9a1   :  { %v1620_v52 = vadd.f32 %v1619_v50, %v1579_v60  ;;  %v1664_v53 = vadd.f32 %v1658_v39, %v4726_v27  ;;  %v4997_v50 = vld [vmem:[%s5413_s1] sm:$0xff] }
 0x9a2   :  { %v1621_v54 = vpop.f32.mrf.mxu0  ;;  %v1662_v55 = vpop.f32.mrf.mxu1 }
 0x9a3   :  { %v1661_v56 = vadd.f32 %v1660_v51, %v1620_v52  ;;  %v1666_v57 = vsel %vm129_vm2, %v1664_v53, 0.0 }
 0x9a4   :  { %1667 = vadd.xlane.f32.xlu1 %v1666_v57 }
 0x9a5   :  { %v1665_v62 = vadd.f32 %v1661_v56, %v4728_v28  ;;  %v1705_v28 = vld [vmem:[%s5413_s1 + $0x58] sm:$0xf]  ;;  %v5005_v56 = vld [vmem:[%s5413_s1 + $0x10] sm:$0xff] }
 0x9a6   :  { %4303 = vmatprep.subr.msk.mxu0 %vm136_vm1, %v1705_v28 }
 0x9a7   :  { %v1669_v2 = vsel %vm129_vm2, %v1665_v62, 0.0  ;;  %4304 = vmatpush3.msk.msra.mxu0 %vm136_vm1, %v1705_v28 }
 0x9a8   :  { %1670 = vadd.xlane.f32.xlu0 %v1669_v2  ;;  %4305 = vmatprep.subr.mxu0 %v1704_v12 }
 0x9a9   :  { %4306 = vmatpush3.msra.mxu0 %v1704_v12 }
 0xa2d   :  { %v1668_v44 = vpop.xlane.xlu1 %1667 }
 0xa2e   :  { %v1672_v7 = vmul.f32 0.083333336, %v1668_v44 }
 0xa30   :  { %v1674_v4 = vsub.f32 %v1664_v53, %v1672_v7 }
 0xa31   :  { %v1671_v45 = vpop.xlane.xlu0 %1670 }
 0xa32   :  { %v1673_v14 = vmul.f32 0.083333336, %v1671_v45  ;;  %v1676_v5 = vmul.f32 %v1674_v4, %v1674_v4 }
 0xa34   :  { %v1675_v6 = vsub.f32 %v1665_v62, %v1673_v14  ;;  %v1678_v27 = vsel %vm129_vm2, %v1676_v5, 0.0  ;;  %v5011_v62 = vld [vmem:[%s5413_s1 + $0x18] sm:$0xff] }
 0xa35   :  { %1679 = vadd.xlane.f32.xlu1 %v1678_v27 }
 0xa36   :  { %v1677_v3 = vmul.f32 %v1675_v6, %v1675_v6 }
 0xa38   :  { %v1681_v11 = vsel %vm129_vm2, %v1677_v3, 0.0 }
 0xa39   :  { %1682 = vadd.xlane.f32.xlu0 %v1681_v11 }
 0xabe   :  { %v1680_v17 = vpop.xlane.xlu1 %1679 }
 0xabf   :  { %v1684_v18 = vmul.f32 0.083333336, %v1680_v17 }
 0xac1   :  { %v1686_v20 = vadd.f32 1e-05, %v1684_v18 }
 0xac2   :  { %v1683_v21 = vpop.xlane.xlu0 %1682 }
 0xac3   :  { %4429 = vrsqrt.f32 %v1686_v20  ;;  %v1685_v24 = vmul.f32 0.083333336, %v1683_v21 }
 0xac5   :  { %v1687_v25 = vadd.f32 1e-05, %v1685_v24 }
 0xac7   :  { %4431 = vrsqrt.f32 %v1687_v25 }
 0xad0   :  { %v4430_v30 = vpop.eup %4429 }
 0xad1   :  { %v1690_v32 = vmul.f32 %v4430_v30, %v1674_v4 }
 0xad3   :  { %v1696_v34 = vmul.f32 %v1695_v29, %v1690_v32 }
 0xad4   :  { %v4432_v36 = vpop.eup %4431 }
 0xad5   :  { %v1691_v37 = vmul.f32 %v4432_v36, %v1675_v6  ;;  %v4941_v9 = vadd.f32 %v1701_v33, %v1696_v34 }
 0xad7   :  { %v1697_v63 = vmul.f32 %v1695_v29, %v1691_v37  ;;  %4307 = vmatprep.mubr.msk.f32.mxu0 %vm129_vm2, %v4941_v9 }
 0xad9   :  { %v4945_v0 = vadd.f32 %v1701_v33, %v1697_v63 }
 0xadb   :  { %4308 = vmatmul.mubr.msk.f32.vlgmr.msra.gmra.mxu0 %vm129_vm2, %v4945_v0 }
 0xb9b   :  { %v4309_v40 = vpop.f32.mrf.mxu0 }
 0xb9c   :  { %v4956_v41 = vadd.f32 %v4309_v40, %v1710_v38 }
 0xb9d   :  { %v1786_v42 = vpop.f32.mrf.mxu0 }
 0xb9e   :  { %v4958_v43 = vadd.f32 %v1786_v42, %v1710_v38  ;;  %1799 = vrot.lane.b32.xlu1 %v4956_v41, %s4504_s6 }
 0xba0   :  { %1797 = vrot.lane.b32.xlu0 %v4958_v43, %s4504_s6  ;;  %4318 = vmatprep.mubr.msk.f32.mxu1 %vm229_vm3, %v4958_v43 }
 0xba4   :  { %1803 = vrot.lane.b32.xlu0 %v4956_v41, %s4505_s7 }
 0xc10   :  { %v1800_v46 = vpop.permute.xlu1 %1799 }
 0xc11   :  { %1807 = vrot.lane.b32.xlu1 %v1800_v46, %s4505_s7 }
 0xc12   :  { %v4969_v47 = vpop.permute.xlu0 %1797 }
 0xc15   :  { %1805 = vrot.lane.b32.xlu1 %v4969_v47, %s4505_s7 }
 0xc16   :  { %v1804_v49 = vpop.permute.xlu0 %1803 }
 0xc19   :  { %1801 = vrot.lane.b32.xlu1 %v4958_v43, %s4505_s7 }
 0xc83   :  { %v1808_v10 = vpop.permute.xlu1 %1807 }
 0xc84   :  { %4310 = vmatprep.subr.msk.mxu1 %vm229_vm3, %v1808_v10 }
 0xc85   :  { %4311 = vmatpush3.xpose.msk.msra.mxu1 %vm229_vm3, %v1808_v10 }
 0xc87   :  { %v1806_v48 = vpop.permute.xlu1 %1805 }
 0xc88   :  { %4312 = vmatprep.subr.msk.mxu1 %vm229_vm3, %v1806_v48 }
 0xc89   :  { %4313 = vmatpush3.xpose.msk.msra.mxu1 %vm229_vm3, %v1806_v48 }
 0xc8a   :  { %4314 = vmatprep.subr.msk.mxu1 %vm229_vm3, %v1804_v49 }
 0xc8b   :  { %v1802_v13 = vpop.permute.xlu1 %1801 }
 0xc8d   :  { %4315 = vmatpush3.xpose.msk.msra.mxu1 %vm229_vm3, %v1804_v49 }
 0xc8e   :  { %4316 = vmatprep.subr.msk.mxu1 %vm229_vm3, %v1802_v13 }
 0xc91   :  { %4317 = vmatpush3.xpose.msk.msra.mxu1 %vm229_vm3, %v1802_v13 }
 0xc94   :  { %4319 = vmatmul.mubr.msk.f32.vlgmr.msra.gmra.mxu1 %vm229_vm3, %v4956_v41 }
 0xc95   :  { %4321 = vmatprep.mubr.msk.f32.mxu1 %vm229_vm3, %v4969_v47 }
 0xc98   :  { %4322 = vmatmul.mubr.msk.f32.gmra.mxu1 %vm229_vm3, %v1800_v46 }
 0xd54   :  { %v4320_v58 = vpop.f32.mrf.mxu1 }
 0xd55   :  { %v1897_v60 = vadd.f32 %v4991_v59, %v4320_v58  ;;  %v2074_v58 = vld [vmem:[%s5413_s1 + $0x68] sm:$0xf] }
 0xd56   :  { %v1891_v39 = vpop.f32.mrf.mxu1 }
 0xd57   :  { %v1892_v51 = vadd.f32 %v4997_v50, %v1891_v39  ;;  %v1913_v52 = vsel %vm331_vm4, %v1897_v60, -inf }
 0xd58   :  { %1914 = vmax.xlane.f32.xlu1 %v1913_v52  ;;  %v4323_v53 = vpop.f32.mrf.mxu1 }
 0xd59   :  { %v1910_v54 = vsel %vm331_vm4, %v1892_v51, -inf  ;;  %v1907_v2 = vadd.f32 %v5011_v62, %v4323_v53 }
 0xd5a   :  { %v1901_v55 = vpop.f32.mrf.mxu1  ;;  %1911 = vmax.xlane.f32.xlu0 %v1910_v54 }
 0xd5b   :  { %v1902_v57 = vadd.f32 %v5005_v56, %v1901_v55  ;;  %v1919_v7 = vsel %vm331_vm4, %v1907_v2, -inf }
 0xd5d   :  { %v1916_v44 = vsel %vm331_vm4, %v1902_v57, -inf }
 0xd5e   :  { %1917 = vmax.xlane.f32.xlu0 %v1916_v44  ;;  %v2078_v44 = vrot.slane %v4952_v1, %v4589_v15 }
 0xd62   :  { %1920 = vmax.xlane.f32.xlu0 %v1919_v7 }
 0xd69   :  { %1960 = vrot.lane.b32.xlu1 %v1800_v46, %s4506_s16 }
 0xde1   :  { %v1915_v4 = vpop.xlane.xlu1 %1914 }
 0xde2   :  { %v1923_v45 = vsub.f32 %v1897_v60, %v1915_v4  ;;  %v2073_v60 = vld [vmem:[%s5413_s1 + $0x60] sm:$0xff] }
 0xde3   :  { %v1912_v14 = vpop.xlane.xlu0 %1911 }
 0xde4   :  { %v1928_v5 = vmul.f32 1.442695, %v1923_v45  ;;  %v1922_v6 = vsub.f32 %v1892_v51, %v1912_v14 }
 0xde5   :  { %v1961_v27 = vpop.permute.xlu1 %1960 }
 0xde6   :  { %4433 = vpow2.f32 %v1928_v5  ;;  %v1926_v3 = vmul.f32 1.442695, %v1922_v6  ;;  %4324 = vmatprep.subr.mxu0 %v1961_v27 }
 0xde7   :  { %4325 = vmatpush3.msra.mxu0 %v1961_v27  ;;  %v1918_v11 = vpop.xlane.xlu0 %1917 }
 0xde8   :  { %4435 = vpow2.f32 %v1926_v3  ;;  %v1924_v29 = vsub.f32 %v1902_v57, %v1918_v11  ;;  %v2204_v11 = vld [vmem:[%s5413_s1 + $0x78] sm:$0xf] }
 0xde9   :  { %4345 = vmatprep.subr.msk.mxu1 %vm136_vm1, %v2204_v11 }
 0xdea   :  { %v1930_v30 = vmul.f32 1.442695, %v1924_v29  ;;  %4346 = vmatpush3.msk.msra.mxu1 %vm136_vm1, %v2204_v11 }
 0xdeb   :  { %v1921_v28 = vpop.xlane.xlu0 %1920 }
 0xdec   :  { %v1925_v12 = vsub.f32 %v1907_v2, %v1921_v28  ;;  %v2203_v28 = vld [vmem:[%s5413_s1 + $0x70] sm:$0xff] }
 0xded   :  { %4347 = vmatprep.subr.mxu1 %v2203_v28 }
 0xdee   :  { %v1932_v17 = vmul.f32 1.442695, %v1925_v12  ;;  %4348 = vmatpush3.msra.mxu1 %v2203_v28 }
 0xdf0   :  { %4437 = vpow2.f32 %v1932_v17 }
 0xdf1   :  { %4439 = vpow2.f32 %v1930_v30 }
 0xdf3   :  { %v4434_v18 = vpop.eup %4433 }
 0xdf4   :  { %v1937_v20 = vsel %vm331_vm4, %v4434_v18, 0.0 }
 0xdf5   :  { %v4436_v21 = vpop.eup %4435  ;;  %1938 = vadd.xlane.f32.xlu0 %v1937_v20 }
 0xdf6   :  { %v1934_v24 = vsel %vm331_vm4, %v4436_v21, 0.0 }
 0xdf7   :  { %1935 = vadd.xlane.f32.xlu1 %v1934_v24 }
 0xdfd   :  { %v4438_v25 = vpop.eup %4437 }
 0xdfe   :  { %v1943_v26 = vsel %vm331_vm4, %v4438_v25, 0.0  ;;  %v4440_v32 = vpop.eup %4439 }
 0xdff   :  { %1944 = vadd.xlane.f32.xlu0 %v1943_v26  ;;  %v1940_v33 = vsel %vm331_vm4, %v4440_v32, 0.0 }
 0xe08   :  { %1956 = vrot.lane.b32.xlu1 %v4956_v41, %s4506_s16 }
 0xe15   :  { %1958 = vrot.lane.b32.xlu0 %v4969_v47, %s4506_s16 }
 0xe2c   :  { %1941 = vadd.xlane.f32.xlu1 %v1940_v33 }
 0xe3d   :  { %1954 = vrot.lane.b32.xlu1 %v4958_v43, %s4506_s16 }
 0xe7e   :  { %v1939_v36 = vpop.xlane.xlu0 %1938 }
 0xe80   :  { %v1936_v34 = vpop.xlane.xlu1 %1935 }
 0xe81   :  { %4441 = vrcp.f32 %v1936_v34 }
 0xe82   :  { %4443 = vrcp.f32 %v1939_v36 }
 0xe84   :  { %v1957_v40 = vpop.permute.xlu1 %1956 }
 0xe88   :  { %v1945_v37 = vpop.xlane.xlu0 %1944 }
 0xe89   :  { %4445 = vrcp.f32 %v1945_v37 }
 0xe8c   :  { %v1959_v63 = vpop.permute.xlu0 %1958 }
 0xe8d   :  { %4326 = vmatprep.subr.mxu0 %v1959_v63 }
 0xe8e   :  { %v4442_v38 = vpop.eup %4441  ;;  %4327 = vmatpush3.msra.mxu0 %v1959_v63 }
 0xe8f   :  { %4328 = vmatprep.subr.mxu0 %v1957_v40  ;;  %v1950_v41 = vmul.f32 %v4442_v38, %v4436_v21  ;;  %v4444_v46 = vpop.eup %4443 }
 0xe90   :  { %4329 = vmatpush3.msra.mxu0 %v1957_v40  ;;  %v1951_v47 = vmul.f32 %v4444_v46, %v4434_v18  ;;  %v2194_v46 = vrot.slane %v4952_v1, %v4671_v31 }
 0xe91   :  { %4332 = vmatprep.mubr.msk.f32.mxu0 %vm331_vm4, %v1950_v41 }
 0xe96   :  { %v4446_v10 = vpop.eup %4445 }
 0xe97   :  { %v1953_v13 = vmul.f32 %v4446_v10, %v4438_v25 }
 0xeb5   :  { %v1942_v42 = vpop.xlane.xlu1 %1941 }
 0xeb6   :  { %4447 = vrcp.f32 %v1942_v42 }
 0xeb9   :  { %v1955_v43 = vpop.permute.xlu1 %1954 }
 0xeba   :  { %4330 = vmatprep.subr.mxu0 %v1955_v43 }
 0xebb   :  { %4331 = vmatpush3.msra.mxu0 %v1955_v43 }
 0xebc   :  { %4333 = vmatmul.mubr.msk.f32.vlgmr.msra.gmra.mxu0 %vm331_vm4, %v1951_v47  ;;  %4338 = vmatprep.subr.msk.mxu0 %vm136_vm1, %v2074_v58 }
 0xebd   :  { %4339 = vmatpush3.msk.msra.mxu0 %vm136_vm1, %v2074_v58 }
 0xebe   :  { %4340 = vmatprep.subr.mxu0 %v2073_v60 }
 0xebf   :  { %4341 = vmatpush3.msra.mxu0 %v2073_v60 }
 0xec3   :  { %v4448_v48 = vpop.eup %4447 }
 0xec4   :  { %v1952_v49 = vmul.f32 %v4448_v48, %v4440_v32  ;;  %v2208_v32 = vrot.slane %v4952_v1, %v4719_v19  ;;  %v2200_v48 = vrot.slane %v4952_v1, %v4714_v16 }
 0xec6   :  { %4335 = vmatprep.mubr.msk.f32.mxu0 %vm331_vm4, %v1952_v49 }
 0xec7   :  { %4336 = vmatmul.mubr.msk.f32.gmra.mxu0 %vm331_vm4, %v1953_v13 }
 0xf7c   :  { %v4334_v39 = vpop.f32.mrf.mxu0 }
 0xf7e   :  { %v2044_v51 = vpop.f32.mrf.mxu0 }
 0xf87   :  { %v4337_v52 = vpop.f32.mrf.mxu0 }
 0xf88   :  { %2067 = vrot.lane.b32.xlu1 %v4337_v52, %s4507_s21 }
 0xf89   :  { %v2054_v53 = vpop.f32.mrf.mxu0 }
 0xf8a   :  { %2065 = vrot.lane.b32.xlu0 %v2054_v53, %s4507_s21 }
 0xffa   :  { %v2068_v54 = vpop.permute.xlu1 %2067 }
 0xffb   :  { %v2072_v2 = vsel %vm229_vm3, %v4334_v39, %v2068_v54 }
 0xffc   :  { %v2066_v55 = vpop.permute.xlu0 %2065 }
 0xffd   :  { %v2071_v57 = vsel %vm229_vm3, %v2044_v51, %v2066_v55 }
 0xffe   :  { %4342 = vmatprep.mubr.msk.f32.mxu0 %vm129_vm2, %v2071_v57 }
 0xfff   :  { %4343 = vmatmul.mubr.msk.f32.vlgmr.msra.gmra.mxu0 %vm129_vm2, %v2072_v2 }
0x1000   :  { %4356 = vmatprep.mubr.msk.f32.mxu0 %vm129_vm2, %v4941_v9 }
0x10bf   :  { %v4344_v7 = vpop.f32.mrf.mxu0 }
0x10c0   :  { %v2160_v4 = vadd.f32 %v4344_v7, %v2078_v44 }
0x10c1   :  { %v2154_v45 = vpop.f32.mrf.mxu0 }
0x10c2   :  { %v2155_v14 = vadd.f32 %v2154_v45, %v2078_v44  ;;  %v2164_v5 = vadd.f32 %v2160_v4, %v4945_v0 }
0x10c4   :  { %v2168_v6 = vsel %vm129_vm2, %v2164_v5, 0.0  ;;  %v2163_v27 = vadd.f32 %v2155_v14, %v4941_v9 }
0x10c5   :  { %2169 = vadd.xlane.f32.xlu1 %v2168_v6 }
0x10c6   :  { %v2165_v3 = vsel %vm129_vm2, %v2163_v27, 0.0 }
0x10c7   :  { %2166 = vadd.xlane.f32.xlu0 %v2165_v3 }
0x10d6   :  { %2296 = vrot.lane.b32.xlu1 %v2204_v11, %s4505_s7 }
0x10da   :  { %2300 = vrot.lane.b32.xlu1 %v2208_v32, %s4505_s7 }
0x114e   :  { %v2170_v9 = vpop.xlane.xlu1 %2169 }
0x114f   :  { %v2172_v12 = vmul.f32 0.083333336, %v2170_v9 }
0x1150   :  { %v2167_v17 = vpop.xlane.xlu0 %2166 }
0x1151   :  { %v2174_v18 = vsub.f32 %v2164_v5, %v2172_v12  ;;  %v2171_v20 = vmul.f32 0.083333336, %v2167_v17 }
0x1152   :  { %v2297_v30 = vpop.permute.xlu1 %2296 }
0x1153   :  { %v2173_v21 = vsub.f32 %v2163_v27, %v2171_v20  ;;  %v2176_v24 = vmul.f32 %v2174_v18, %v2174_v18  ;;  %4352 = vmatprep.subr.msk.mxu0 %vm136_vm1, %v2297_v30 }
0x1154   :  { %4353 = vmatpush3.msk.msra.mxu0 %vm136_vm1, %v2297_v30 }
0x1155   :  { %v2180_v25 = vsel %vm129_vm2, %v2176_v24, 0.0  ;;  %v2175_v26 = vmul.f32 %v2173_v21, %v2173_v21 }
0x1156   :  { %2181 = vadd.xlane.f32.xlu0 %v2180_v25 }
0x1157   :  { %v2177_v29 = vsel %vm129_vm2, %v2175_v26, 0.0 }
0x115a   :  { %2178 = vadd.xlane.f32.xlu0 %v2177_v29 }
0x1170   :  { %2294 = vrot.lane.b32.xlu0 %v2203_v28, %s4505_s7 }
0x11df   :  { %v2182_v33 = vpop.xlane.xlu0 %2181 }
0x11e0   :  { %v2184_v34 = vmul.f32 0.083333336, %v2182_v33 }
0x11e2   :  { %v2186_v36 = vadd.f32 1e-05, %v2184_v34 }
0x11e3   :  { %v2179_v37 = vpop.xlane.xlu0 %2178 }
0x11e4   :  { %4449 = vrsqrt.f32 %v2186_v36  ;;  %v2183_v63 = vmul.f32 0.083333336, %v2179_v37 }
0x11e6   :  { %v2185_v38 = vadd.f32 1e-05, %v2183_v63 }
0x11e7   :  { %v2295_v40 = vpop.permute.xlu0 %2294 }
0x11e8   :  { %4451 = vrsqrt.f32 %v2185_v38  ;;  %4354 = vmatprep.subr.mxu0 %v2295_v40 }
0x11e9   :  { %4355 = vmatpush3.msra.mxu0 %v2295_v40 }
0x11ea   :  { %4357 = vmatmul.mubr.msk.f32.vlgmr.msra.gmra.mxu0 %vm129_vm2, %v4945_v0  ;;  %v2301_v0 = vpop.permute.xlu1 %2300 }
0x11f1   :  { %v4450_v41 = vpop.eup %4449 }
0x11f2   :  { %v2190_v42 = vmul.f32 %v4450_v41, %v2174_v18 }
0x11f4   :  { %v2196_v10 = vmul.f32 %v2194_v46, %v2190_v42 }
0x11f5   :  { %v4452_v43 = vpop.eup %4451 }
0x11f6   :  { %v2189_v47 = vmul.f32 %v4452_v43, %v2173_v21  ;;  %v5078_v58 = vadd.f32 %v2200_v48, %v2196_v10 }
0x11f8   :  { %v2195_v49 = vmul.f32 %v2194_v46, %v2189_v47 }
0x11fa   :  { %v5076_v13 = vadd.f32 %v2200_v48, %v2195_v49 }
0x11fc   :  { %4349 = vmatprep.mubr.msk.f32.mxu1 %vm129_vm2, %v5076_v13 }
0x11fd   :  { %4350 = vmatmul.mubr.msk.f32.vlgmr.msra.gmra.mxu1 %vm129_vm2, %v5078_v58 }
0x12aa   :  { %v4358_v60 = vpop.f32.mrf.mxu0 }
0x12ab   :  { %v5084_v39 = vadd.f32 %v4358_v60, %v2301_v0 }
0x12ac   :  { %v2371_v51 = vpop.f32.mrf.mxu0 }
0x12ad   :  { %v5086_v52 = vadd.f32 %v2371_v51, %v2301_v0  ;;  %2390 = vrot.lane.b32.xlu1 %v5084_v39, %s4504_s6 }
0x12af   :  { %2388 = vrot.lane.b32.xlu0 %v5086_v52, %s4504_s6 }
0x12bd   :  { %v4351_v53 = vpop.f32.mrf.mxu1 }
0x12be   :  { %v2290_v54 = vadd.f32 %v4351_v53, %v2208_v32 }
0x12bf   :  { %v2284_v55 = vpop.f32.mrf.mxu1 }
0x12c0   :  { %v2285_v57 = vadd.f32 %v2284_v55, %v2208_v32  ;;  %2384 = vrot.lane.b32.xlu0 %v2290_v54, %s4504_s6 }
0x12c2   :  { %4367 = vmatprep.mubr.msk.f32.mxu1 %vm229_vm3, %v2285_v57  ;;  %2382 = vrot.lane.b32.xlu1 %v2285_v57, %s4504_s6 }
0x131f   :  { %v2391_v2 = vpop.permute.xlu1 %2390 }
0x1320   :  { %4359 = vmatprep.subr.msk.mxu1 %vm229_vm3, %v2391_v2 }
0x1321   :  { %4360 = vmatpush3.xpose.msk.msra.mxu1 %vm229_vm3, %v2391_v2  ;;  %v2389_v44 = vpop.permute.xlu0 %2388 }
0x1322   :  { %4361 = vmatprep.subr.msk.mxu1 %vm229_vm3, %v2389_v44 }
0x1325   :  { %4362 = vmatpush3.xpose.msk.msra.mxu1 %vm229_vm3, %v2389_v44 }
0x1326   :  { %4363 = vmatprep.subr.msk.mxu1 %vm229_vm3, %v5084_v39 }
0x1329   :  { %4364 = vmatpush3.xpose.msk.msra.mxu1 %vm229_vm3, %v5084_v39 }
0x132a   :  { %4365 = vmatprep.subr.msk.mxu1 %vm229_vm3, %v5086_v52 }
0x132d   :  { %4366 = vmatpush3.xpose.msk.msra.mxu1 %vm229_vm3, %v5086_v52 }
0x1330   :  { %4368 = vmatmul.mubr.msk.f32.vlgmr.msra.gmra.mxu1 %vm229_vm3, %v2290_v54 }
0x1332   :  { %v2385_v4 = vpop.permute.xlu0 %2384 }
0x1334   :  { %v2383_v7 = vpop.permute.xlu1 %2382 }
0x1335   :  { %4370 = vmatprep.mubr.msk.f32.mxu1 %vm229_vm3, %v2383_v7 }
0x1336   :  { %4371 = vmatmul.mubr.msk.f32.gmra.mxu1 %vm229_vm3, %v2385_v4 }
0x1337   :  { %3080 = vmatprep.mubr.bf16.mxu1 %v4508_v61 }
0x13f0   :  { %v4369_v45 = vpop.f32.mrf.mxu1 }
0x13f1   :  { %v2480_v14 = vadd.f32 %v4991_v59, %v4369_v45 }
0x13f2   :  { %v2474_v5 = vpop.f32.mrf.mxu1 }
0x13f3   :  { %v2475_v6 = vadd.f32 %v4997_v50, %v2474_v5  ;;  %v2496_v27 = vsel %vm331_vm4, %v2480_v14, -inf }
0x13f4   :  { %2497 = vmax.xlane.f32.xlu0 %v2496_v27 }
0x13f5   :  { %v2493_v3 = vsel %vm331_vm4, %v2475_v6, -inf }
0x13f6   :  { %2494 = vmax.xlane.f32.xlu1 %v2493_v3  ;;  %v4372_v11 = vpop.f32.mrf.mxu1 }
0x13f7   :  { %v2490_v28 = vadd.f32 %v5011_v62, %v4372_v11  ;;  %v2661_v11 = vrot.slane %v4952_v1, %v4825_v22 }
0x13f8   :  { %v2484_v9 = vpop.f32.mrf.mxu1 }
0x13f9   :  { %v2485_v12 = vadd.f32 %v5005_v56, %v2484_v9  ;;  %v2502_v17 = vsel %vm331_vm4, %v2490_v28, -inf }
0x13fa   :  { %2503 = vmax.xlane.f32.xlu1 %v2502_v17 }
0x13fb   :  { %v2499_v59 = vsel %vm331_vm4, %v2485_v12, -inf }
0x13fc   :  { %2500 = vmax.xlane.f32.xlu0 %v2499_v59 }
0x140b   :  { %2541 = vrot.lane.b32.xlu1 %v2389_v44, %s4505_s7  ;;  %v2656_v44 = vld [vmem:[%s5413_s1 + $0x80] sm:$0xff] }
0x1412   :  { %2543 = vrot.lane.b32.xlu0 %v2391_v2, %s4505_s7  ;;  %v2657_v2 = vld [vmem:[%s5413_s1 + $0x88] sm:$0xf] }
0x147d   :  { %v2498_v50 = vpop.xlane.xlu0 %2497 }
0x147e   :  { %v2506_v18 = vsub.f32 %v2480_v14, %v2498_v50 }
0x147f   :  { %v2495_v20 = vpop.xlane.xlu1 %2494 }
0x1480   :  { %v2511_v21 = vmul.f32 1.442695, %v2506_v18  ;;  %v2505_v24 = vsub.f32 %v2475_v6, %v2495_v20 }
0x1482   :  { %4453 = vpow2.f32 %v2511_v21  ;;  %v2509_v62 = vmul.f32 1.442695, %v2505_v24 }
0x1483   :  { %v2504_v25 = vpop.xlane.xlu1 %2503 }
0x1484   :  { %4455 = vpow2.f32 %v2509_v62  ;;  %v2508_v56 = vsub.f32 %v2490_v28, %v2504_v25 }
0x1485   :  { %v2501_v26 = vpop.xlane.xlu0 %2500 }
0x1486   :  { %v2515_v29 = vmul.f32 1.442695, %v2508_v56  ;;  %v2507_v30 = vsub.f32 %v2485_v12, %v2501_v26 }
0x1487   :  { %v2542_v34 = vpop.permute.xlu1 %2541 }
0x1488   :  { %4457 = vpow2.f32 %v2515_v29  ;;  %v2513_v32 = vmul.f32 1.442695, %v2507_v30 }
0x1489   :  { %v2544_v33 = vpop.permute.xlu0 %2543 }
0x148a   :  { %4459 = vpow2.f32 %v2513_v32  ;;  %4373 = vmatprep.subr.mxu0 %v2544_v33 }
0x148b   :  { %4374 = vmatpush3.msra.mxu0 %v2544_v33  ;;  %v4094_v33 = vld [vmem:[%s5415_s3 + $0xc8] sm:$0x33] }
0x148c   :  { %4375 = vmatprep.subr.mxu0 %v2542_v34 }
0x148d   :  { %4376 = vmatpush3.msra.mxu0 %v2542_v34  ;;  %v4085_v34 = vld [vmem:[%s5415_s3 + $0x80] sm:$0xff] }
0x148f   :  { %v4454_v36 = vpop.eup %4453 }
0x1490   :  { %v2520_v37 = vsel %vm331_vm4, %v4454_v36, 0.0 }
0x1491   :  { %v4456_v63 = vpop.eup %4455  ;;  %2521 = vadd.xlane.f32.xlu1 %v2520_v37 }
0x1492   :  { %v2517_v38 = vsel %vm331_vm4, %v4456_v63, 0.0 }
0x1493   :  { %2518 = vadd.xlane.f32.xlu0 %v2517_v38 }
0x1495   :  { %v4458_v40 = vpop.eup %4457 }
0x1496   :  { %v2526_v41 = vsel %vm331_vm4, %v4458_v40, 0.0 }
0x1497   :  { %v4460_v42 = vpop.eup %4459  ;;  %2527 = vadd.xlane.f32.xlu1 %v2526_v41 }
0x1498   :  { %v2523_v46 = vsel %vm331_vm4, %v4460_v42, 0.0 }
0x1499   :  { %2524 = vadd.xlane.f32.xlu0 %v2523_v46  ;;  %v4087_v46 = vld [vmem:[%s5415_s3 + $0x90] sm:$0xff] }
0x14a8   :  { %2539 = vrot.lane.b32.xlu1 %v5084_v39, %s4505_s7 }
0x14af   :  { %2537 = vrot.lane.b32.xlu0 %v5086_v52, %s4505_s7 }
0x151a   :  { %v2522_v43 = vpop.xlane.xlu1 %2521 }
0x151b   :  { %4461 = vrcp.f32 %v2522_v43  ;;  %v4095_v43 = vld [vmem:[%s5415_s3 + $0xd0] sm:$0x33] }
0x151c   :  { %v2519_v47 = vpop.xlane.xlu0 %2518 }
0x151d   :  { %4463 = vrcp.f32 %v2519_v47  ;;  %v4108_v47 = vcombine.high %v4087_v46, %v4095_v43 }
0x1520   :  { %v2528_v10 = vpop.xlane.xlu1 %2527 }
0x1521   :  { %4465 = vrcp.f32 %v2528_v10  ;;  %v4107_v10 = vcombine.low %v4087_v46, %v4095_v43  ;;  %v5264_v46 = vld [vmem:[%s5416_s4 + $0xd0] sm:$0x33]  ;;  %v5269_v43 = vld [vmem:[%s5416_s4 + $0x98] sm:$0xff] }
0x1522   :  { %v2525_v48 = vpop.xlane.xlu0 %2524 }
0x1523   :  { %4467 = vrcp.f32 %v2525_v48  ;;  %v4088_v48 = vld [vmem:[%s5415_s3 + $0x98] sm:$0xff] }
0x1524   :  { %v2540_v49 = vpop.permute.xlu1 %2539 }
0x1525   :  { %4377 = vmatprep.subr.mxu0 %v2540_v49 }
0x1526   :  { %4378 = vmatpush3.msra.mxu0 %v2540_v49  ;;  %v2538_v0 = vpop.permute.xlu0 %2537  ;;  %v4096_v49 = vld [vmem:[%s5415_s3 + $0xd8] sm:$0x33] }
0x1527   :  { %4379 = vmatprep.subr.mxu0 %v2538_v0 }
0x1528   :  { %4380 = vmatpush3.msra.mxu0 %v2538_v0  ;;  %v4462_v60 = vpop.eup %4461  ;;  %v4110_v0 = vcombine.high %v4088_v48, %v4096_v49 }
0x1529   :  { %v2534_v53 = vmul.f32 %v4462_v60, %v4454_v36  ;;  %4387 = vmatprep.subr.msk.mxu0 %vm136_vm1, %v2657_v2  ;;  %v4109_v60 = vcombine.low %v4088_v48, %v4096_v49 }
0x152a   :  { %v4464_v51 = vpop.eup %4463 }
0x152b   :  { %v2533_v39 = vmul.f32 %v4464_v51, %v4456_v63  ;;  %v4093_v63 = vld [vmem:[%s5415_s3 + $0xc0] sm:$0x33] }
0x152c   :  { %v4104_v38 = vcombine.high %v4085_v34, %v4093_v63 }
0x152d   :  { %4381 = vmatprep.mubr.msk.f32.mxu0 %vm331_vm4, %v2533_v39 }
0x152e   :  { %4382 = vmatmul.mubr.msk.f32.vlgmr.msra.gmra.mxu0 %vm331_vm4, %v2534_v53  ;;  %v4466_v52 = vpop.eup %4465 }
0x152f   :  { %v2536_v57 = vmul.f32 %v4466_v52, %v4458_v40  ;;  %4388 = vmatpush3.msk.msra.mxu0 %vm136_vm1, %v2657_v2  ;;  %v4103_v40 = vcombine.low %v4085_v34, %v4093_v63  ;;  %v4135_v34 = vld [vmem:[%s5416_s4 + $0x80] sm:$0xff] }
0x1530   :  { %v4468_v54 = vpop.eup %4467  ;;  %4389 = vmatprep.subr.mxu0 %v2656_v44 }
0x1531   :  { %v2535_v55 = vmul.f32 %v4468_v54, %v4460_v42  ;;  %4390 = vmatpush3.msra.mxu0 %v2656_v44  ;;  %v2958_v42 = vsel %vm795_vm5, %v4103_v40, 0 }
0x1532   :  { %4119 = vmatprep.subr.msk.bf16.mxu0 %vm795_vm5, %v4104_v38 }
0x1533   :  { %4384 = vmatprep.mubr.msk.f32.mxu0 %vm331_vm4, %v2535_v55 }
0x1534   :  { %4385 = vmatmul.mubr.msk.f32.gmra.mxu0 %vm331_vm4, %v2536_v57  ;;  %v2777_v57 = vrot.slane %v4952_v1, %v4831_v35 }
0x15ee   :  { %v4383_v7 = vpop.f32.mrf.mxu0 }
0x15f0   :  { %v2627_v4 = vpop.f32.mrf.mxu0 }
0x15f4   :  { %v4386_v45 = vpop.f32.mrf.mxu0 }
0x15f5   :  { %2650 = vrot.lane.b32.xlu0 %v4386_v45, %s4507_s21 }
0x15f6   :  { %v2637_v14 = vpop.f32.mrf.mxu0 }
0x15f7   :  { %2648 = vrot.lane.b32.xlu1 %v2637_v14, %s4507_s21 }
0x1667   :  { %v2651_v5 = vpop.permute.xlu0 %2650 }
0x1668   :  { %v2655_v3 = vsel %vm229_vm3, %v4383_v7, %v2651_v5 }
0x1669   :  { %v2649_v6 = vpop.permute.xlu1 %2648 }
0x166a   :  { %v2654_v27 = vsel %vm229_vm3, %v2627_v4, %v2649_v6  ;;  %v2783_v4 = vrot.slane %v4952_v1, %v4828_v23  ;;  %v4089_v6 = vld [vmem:[%s5415_s3 + $0xa0] sm:$0xff]  ;;  %v4098_v1 = vld [vmem:[%s5415_s3 + $0xe8] sm:$0x33] }
0x166b   :  { %4391 = vmatprep.mubr.msk.f32.mxu0 %vm129_vm2, %v2654_v27 }
0x166c   :  { %4392 = vmatmul.mubr.msk.f32.vlgmr.msra.gmra.mxu0 %vm129_vm2, %v2655_v3 }
0x166d   :  { %3037 = vmatprep.mubr.bf16.mxu0 %v4508_v61  ;;  %3020 = vmatpush1.bf16.msra.mxu0 %v2958_v42  ;;  %v5259_v42 = vld [vmem:[%s5416_s4 + $0x90] sm:$0xff] }
0x166e   :  { %4123 = vmatprep.subr.msk.bf16.mxu0 %vm795_vm5, %v4108_v47  ;;  %v4156_v47 = vcombine.high %v5259_v42, %v5264_v46  ;;  %v4155_v48 = vcombine.low %v5259_v42, %v5264_v46  ;;  %v5339_v42 = vld [vmem:[%s5416_s4 + $0xb0] sm:$0xff] }
0x166f   :  { %v5344_v46 = vld [vmem:[%s5416_s4 + $0xf0] sm:$0x33] }
0x172c   :  { %v4393_v28 = vpop.f32.mrf.mxu0 }
0x172d   :  { %v2743_v9 = vadd.f32 %v4393_v28, %v2661_v11  ;;  %v4090_v28 = vld [vmem:[%s5415_s3 + $0xa8] sm:$0xff] }
0x172e   :  { %v2737_v12 = vpop.f32.mrf.mxu0 }
0x172f   :  { %v2738_v17 = vadd.f32 %v2737_v12, %v2661_v11  ;;  %v2747_v59 = vadd.f32 %v2743_v9, %v5078_v58  ;;  %v4097_v11 = vld [vmem:[%s5415_s3 + $0xe0] sm:$0x33]  ;;  %v2970_v12 = vsel %vm795_vm5, %v4107_v10, 0  ;;  %v5276_v10 = vld [vmem:[%s5416_s4 + $0xd8] sm:$0x33] }
0x1730   :  { %v4157_v49 = vcombine.low %v5269_v43, %v5276_v10 }
0x1731   :  { %v2751_v50 = vsel %vm129_vm2, %v2747_v59, 0.0  ;;  %v2746_v18 = vadd.f32 %v2738_v17, %v5076_v13  ;;  %v4086_v13 = vld [vmem:[%s5415_s3 + $0x88] sm:$0xff]  ;;  %v2976_v17 = vsel %vm795_vm5, %v4109_v60, 0 }
0x1732   :  { %2752 = vadd.xlane.f32.xlu0 %v2751_v50  ;;  %v4106_v36 = vcombine.high %v4086_v13, %v4094_v33  ;;  %v4105_v37 = vcombine.low %v4086_v13, %v4094_v33  ;;  %v4114_v50 = vcombine.high %v4090_v28, %v4098_v1  ;;  %v4101_v60 = vld [vmem:[%s5414_s2 + $0x1] ss:$2 sm:$0xff] }
0x1733   :  { %v2748_v20 = vsel %vm129_vm2, %v2746_v18, 0.0 }
0x1734   :  { %2749 = vadd.xlane.f32.xlu1 %v2748_v20  ;;  %4121 = vmatprep.subr.msk.bf16.mxu1 %vm795_vm5, %v4106_v36  ;;  %v2964_v41 = vsel %vm795_vm5, %v4105_v37, 0  ;;  %v4113_v20 = vcombine.low %v4090_v28, %v4098_v1  ;;  %v4143_v36 = vld [vmem:[%s5416_s4 + $0xc0] sm:$0x33]  ;;  %v4136_v37 = vld [vmem:[%s5416_s4 + $0x88] sm:$0xff] }
0x1735   :  { %3063 = vmatpush1.bf16.msra.mxu1 %v2964_v41  ;;  %v4152_v63 = vcombine.high %v4135_v34, %v4143_v36  ;;  %v4151_v38 = vcombine.low %v4135_v34, %v4143_v36  ;;  %v2837_v34 = vrot.slane %v4101_v60, %v4831_v35 }
0x1736   :  { %4125 = vmatprep.subr.msk.bf16.mxu1 %vm795_vm5, %v4110_v0  ;;  %v4158_v0 = vcombine.high %v5269_v43, %v5276_v10  ;;  %v5349_v43 = vld [vmem:[%s5416_s4 + $0xb8] sm:$0xff] }
0x17bb   :  { %v2753_v21 = vpop.xlane.xlu0 %2752 }
0x17bc   :  { %v2755_v24 = vmul.f32 0.083333336, %v2753_v21  ;;  %v4091_v21 = vld [vmem:[%s5415_s3 + $0xb0] sm:$0xff] }
0x17bd   :  { %v2750_v62 = vpop.xlane.xlu1 %2749 }
0x17be   :  { %v2757_v25 = vsub.f32 %v2747_v59, %v2755_v24  ;;  %v2754_v56 = vmul.f32 0.083333336, %v2750_v62  ;;  %v4112_v59 = vcombine.high %v4089_v6, %v4097_v11  ;;  %v4099_v24 = vld [vmem:[%s5415_s3 + $0xf0] sm:$0x33]  ;;  %v4092_v62 = vld [vmem:[%s5415_s3 + $0xb8] sm:$0xff] }
0x17c0   :  { %v2756_v26 = vsub.f32 %v2746_v18, %v2754_v56  ;;  %v2759_v29 = vmul.f32 %v2757_v25, %v2757_v25  ;;  %v4111_v18 = vcombine.low %v4089_v6, %v4097_v11 }
0x17c2   :  { %v2763_v30 = vsel %vm129_vm2, %v2759_v29, 0.0  ;;  %v2758_v32 = vmul.f32 %v2756_v26, %v2756_v26  ;;  %v2982_v56 = vsel %vm795_vm5, %v4111_v18, 0  ;;  %v4116_v29 = vcombine.high %v4091_v21, %v4099_v24 }
0x17c3   :  { %2764 = vadd.xlane.f32.xlu1 %v2763_v30 }
0x17c4   :  { %v2760_v58 = vsel %vm129_vm2, %v2758_v32, 0.0  ;;  %v4115_v32 = vcombine.low %v4091_v21, %v4099_v24  ;;  %v2841_v21 = vrot.slane %v4101_v60, %v4828_v23  ;;  %v5296_v24 = vld [vmem:[%s5416_s4 + $0xa0] sm:$0xff] }
0x17c5   :  { %2761 = vadd.xlane.f32.xlu0 %v2760_v58 }
0x17c6   :  { %v2994_v13 = vsel %vm795_vm5, %v4115_v32, 0  ;;  %v5311_v32 = vld [vmem:[%s5416_s4 + $0xe8] sm:$0x33] }
0x184c   :  { %v2765_v51 = vpop.xlane.xlu1 %2764 }
0x184d   :  { %v2767_v39 = vmul.f32 0.083333336, %v2765_v51 }
0x184e   :  { %v2762_v53 = vpop.xlane.xlu0 %2761 }
0x184f   :  { %v2769_v52 = vadd.f32 1e-05, %v2767_v39  ;;  %v2766_v54 = vmul.f32 0.083333336, %v2762_v53  ;;  %v2817_v53 = vrot.slane %v4101_v60, %v4589_v15 }
0x1851   :  { %4469 = vrsqrt.f32 %v2769_v52  ;;  %v2768_v55 = vadd.f32 1e-05, %v2766_v54  ;;  %v2825_v52 = vrot.slane %v4101_v60, %v4714_v16  ;;  %v2813_v54 = vrot.slane %v4101_v60, %v4571_v8 }
0x1853   :  { %4471 = vrsqrt.f32 %v2768_v55  ;;  %v2821_v55 = vrot.slane %v4101_v60, %v4671_v31 }
0x185e   :  { %v4470_v2 = vpop.eup %4469 }
0x185f   :  { %v2773_v44 = vmul.f32 %v4470_v2, %v2757_v25  ;;  %v4100_v25 = vld [vmem:[%s5415_s3 + $0xf8] sm:$0x33] }
0x1860   :  { %v4472_v7 = vpop.eup %4471  ;;  %v4118_v30 = vcombine.high %v4092_v62, %v4100_v25  ;;  %v4117_v58 = vcombine.low %v4092_v62, %v4100_v25  ;;  %v5301_v62 = vld [vmem:[%s5416_s4 + $0xe0] sm:$0x33]  ;;  %v5306_v25 = vld [vmem:[%s5416_s4 + $0xa8] sm:$0xff] }
0x1861   :  { %v2779_v45 = vmul.f32 %v2777_v57, %v2773_v44  ;;  %v2772_v14 = vmul.f32 %v4472_v7, %v2756_v26  ;;  %v2988_v26 = vsel %vm795_vm5, %v4113_v20, 0  ;;  %v2833_v20 = vrot.slane %v4101_v60, %v4825_v22 }
0x1862   :  { %v3000_v33 = vsel %vm795_vm5, %v4117_v58, 0 }
0x1863   :  { %v2778_v5 = vmul.f32 %v2777_v57, %v2772_v14  ;;  %v5193_v27 = vadd.f32 %v2783_v4, %v2779_v45 }
0x1865   :  { %v5195_v3 = vadd.f32 %v2783_v4, %v2778_v5 }
0x1867   :  { %v2786_v9 = vpack.c.bf16 %v5193_v27, %v5195_v3 }
0x1869   :  { %4120 = vmatmul.mubr.msk.bf16.vlgmr.msra.gmra.mxu0 %vm129_vm2, %v2786_v9  ;;  %4122 = vmatmul.mubr.msk.bf16.vlgmr.msra.gmra.mxu1 %vm129_vm2, %v2786_v9 }
0x186a   :  { %3106 = vmatpush1.bf16.msra.mxu0 %v2970_v12  ;;  %3149 = vmatpush1.bf16.msra.mxu1 %v2976_v17 }
0x186b   :  { %3123 = vmatprep.mubr.bf16.mxu0 %v4508_v61  ;;  %3166 = vmatprep.mubr.bf16.mxu1 %v4508_v61 }
0x186c   :  { %4127 = vmatprep.subr.msk.bf16.mxu0 %vm795_vm5, %v4112_v59  ;;  %4129 = vmatprep.subr.msk.bf16.mxu1 %vm795_vm5, %v4114_v50 }
0x1871   :  { %4124 = vmatmul.mubr.msk.bf16.vlgmr.msra.gmra.mxu0 %vm129_vm2, %v2786_v9  ;;  %4126 = vmatmul.mubr.msk.bf16.vlgmr.msra.gmra.mxu1 %vm129_vm2, %v2786_v9 }
0x1872   :  { %3192 = vmatpush1.bf16.msra.mxu0 %v2982_v56  ;;  %3235 = vmatpush1.bf16.msra.mxu1 %v2988_v26 }
0x1873   :  { %3209 = vmatprep.mubr.bf16.mxu0 %v4508_v61  ;;  %3252 = vmatprep.mubr.bf16.mxu1 %v4508_v61 }
0x1874   :  { %4131 = vmatprep.subr.msk.bf16.mxu0 %vm795_vm5, %v4116_v29  ;;  %4133 = vmatprep.subr.msk.bf16.mxu1 %vm795_vm5, %v4118_v30 }
0x1879   :  { %4128 = vmatmul.mubr.msk.bf16.vlgmr.msra.gmra.mxu0 %vm129_vm2, %v2786_v9  ;;  %4130 = vmatmul.mubr.msk.bf16.vlgmr.msra.gmra.mxu1 %vm129_vm2, %v2786_v9 }
0x187a   :  { %3278 = vmatpush1.bf16.msra.mxu0 %v2994_v13  ;;  %3321 = vmatpush1.bf16.msra.mxu1 %v3000_v33  ;;  %v2829_v33 = vrot.slane %v4101_v60, %v4719_v19  ;;  %v4162_v60 = vcombine.high %v5306_v25, %v5311_v32 }
0x187b   :  { %3295 = vmatprep.mubr.bf16.mxu0 %v4508_v61  ;;  %3338 = vmatprep.mubr.bf16.mxu1 %v4508_v61  ;;  %v4144_v61 = vld [vmem:[%s5416_s4 + $0xc8] sm:$0x33] }
0x187c   :  { %v4153_v40 = vcombine.low %v4136_v37, %v4144_v61  ;;  %v4154_v41 = vcombine.high %v4136_v37, %v4144_v61  ;;  %3513 = vmatprep.subr.bf16.mxu0 %v4152_v63 }
0x187e   :  { %3554 = vmatprep.subr.bf16.mxu1 %v4154_v41 }
0x1881   :  { %4132 = vmatmul.mubr.msk.bf16.vlgmr.msra.gmra.mxu0 %vm129_vm2, %v2786_v9  ;;  %4134 = vmatmul.mubr.msk.bf16.vlgmr.msra.gmra.mxu1 %vm129_vm2, %v2786_v9 }
0x1882   :  { %3514 = vmatpush1.bf16.xpose.msra.mxu0 %v4151_v38  ;;  %3555 = vmatpush1.bf16.xpose.msra.mxu1 %v4153_v40  ;;  %v4160_v38 = vcombine.high %v5296_v24, %v5301_v62 }
0x1883   :  { %3595 = vmatprep.subr.bf16.mxu0 %v4156_v47  ;;  %3636 = vmatprep.subr.bf16.mxu1 %v4158_v0 }
0x1929   :  { %v3039_v51 = vpop.f32.mrf.mxu0  ;;  %v3082_v39 = vpop.f32.mrf.mxu1 }
0x192a   :  { %v3040_v6 = vadd.f32 %v3039_v51, %v2813_v54  ;;  %v3083_v11 = vadd.f32 %v3082_v39, %v2821_v55  ;;  %v5320_v39 = vld [vmem:[%s5414_s2 + $0x11] ss:$2 sm:$0xff] }
0x192b   :  { %v3041_v57 = vpop.f32.mrf.mxu0  ;;  %v3084_v2 = vpop.f32.mrf.mxu1 }
0x192c   :  { %v3042_v4 = vadd.f32 %v3041_v57, %v2817_v53  ;;  %v3085_v45 = vadd.f32 %v3084_v2, %v2825_v52  ;;  %v3349_v58 = vmax.f32 %v3040_v6, 0.0  ;;  %v3351_v13 = vmax.f32 %v3083_v11, 0.0 }
0x192d   :  { %v3043_v44 = vpop.f32.mrf.mxu0  ;;  %v3086_v7 = vpop.f32.mrf.mxu1 }
0x192e   :  { %v3044_v14 = vadd.f32 %v3043_v44, %v2813_v54  ;;  %v3087_v5 = vadd.f32 %v3086_v7, %v2821_v55  ;;  %v3350_v56 = vmax.f32 %v3042_v4, 0.0  ;;  %v3352_v26 = vmax.f32 %v3085_v45, 0.0 }
0x192f   :  { %v3045_v28 = vpop.f32.mrf.mxu0  ;;  %v3088_v1 = vpop.f32.mrf.mxu1  ;;  %v2845_v45 = vrot.slane %v5320_v39, %v4571_v8 }
0x1930   :  { %v3046_v9 = vadd.f32 %v3045_v28, %v2817_v53  ;;  %v3089_v12 = vadd.f32 %v3088_v1, %v2825_v52  ;;  %v3365_v17 = vmax.f32 %v3044_v14, 0.0  ;;  %v3367_v59 = vmax.f32 %v3087_v5, 0.0 }
0x1931   :  { %v3125_v50 = vpop.f32.mrf.mxu0  ;;  %v3168_v18 = vpop.f32.mrf.mxu1  ;;  %v2849_v28 = vrot.slane %v5320_v39, %v4589_v15  ;;  %v2857_v1 = vrot.slane %v5320_v39, %v4714_v16 }
0x1932   :  { %v3366_v29 = vmax.f32 %v3046_v9, 0.0  ;;  %v3368_v30 = vmax.f32 %v3089_v12, 0.0  ;;  %v3381_v40 = vpack.c.bf16 %v3365_v17, %v3349_v58  ;;  %v3383_v41 = vpack.c.bf16 %v3367_v59, %v3351_v13  ;;  %v5354_v12 = vld [vmem:[%s5416_s4 + $0xf8] sm:$0x33] }
0x1933   :  { %v3127_v36 = vpop.f32.mrf.mxu0  ;;  %v3170_v37 = vpop.f32.mrf.mxu1  ;;  %v3126_v55 = vadd.f32 %v3125_v50, %v2829_v33  ;;  %v3169_v57 = vadd.f32 %v3168_v18, %v2837_v34  ;;  %v2853_v50 = vrot.slane %v5320_v39, %v4671_v31 }
0x1934   :  { %v3382_v63 = vpack.c.bf16 %v3366_v29, %v3350_v56  ;;  %v3384_v61 = vpack.c.bf16 %v3368_v30, %v3352_v26  ;;  %v3128_v47 = vadd.f32 %v3127_v36, %v2833_v20  ;;  %v3171_v53 = vadd.f32 %v3170_v37, %v2841_v21 }
0x1935   :  { %v3129_v0 = vpop.f32.mrf.mxu0  ;;  %v3172_v51 = vpop.f32.mrf.mxu1  ;;  %v3353_v17 = vmax.f32 %v3126_v55, 0.0  ;;  %v3355_v59 = vmax.f32 %v3169_v57, 0.0  ;;  %v4161_v29 = vcombine.low %v5306_v25, %v5311_v32  ;;  %v4164_v30 = vcombine.high %v5339_v42, %v5344_v46 }
0x1936   :  { %v3130_v52 = vadd.f32 %v3129_v0, %v2829_v33  ;;  %v3173_v54 = vadd.f32 %v3172_v51, %v2837_v34  ;;  %3531 = vmatprep.mubr.bf16.mxu0 %v3382_v63  ;;  %3572 = vmatprep.mubr.bf16.mxu1 %v3384_v61  ;;  %v3354_v10 = vmax.f32 %v3128_v47, 0.0  ;;  %v4166_v37 = vcombine.high %v5349_v43, %v5354_v12 }
0x1937   :  { %v3131_v2 = vpop.f32.mrf.mxu0  ;;  %v3174_v44 = vpop.f32.mrf.mxu1  ;;  %3532 = vmatmul.mubr.bf16.vlgmr.msra.gmra.mxu0 %v3381_v40  ;;  %3573 = vmatmul.mubr.bf16.vlgmr.msra.gmra.mxu1 %v3383_v41 }
0x1938   :  { %v3132_v7 = vadd.f32 %v3131_v2, %v2833_v20  ;;  %v3175_v4 = vadd.f32 %v3174_v44, %v2841_v21  ;;  %3596 = vmatpush1.bf16.xpose.msra.mxu0 %v4155_v48  ;;  %3637 = vmatpush1.bf16.xpose.msra.mxu1 %v4157_v49  ;;  %v3369_v14 = vmax.f32 %v3130_v52, 0.0  ;;  %v3371_v5 = vmax.f32 %v3173_v54, 0.0 }
0x1939   :  { %v3211_v6 = vpop.f32.mrf.mxu0  ;;  %v3254_v11 = vpop.f32.mrf.mxu1  ;;  %3677 = vmatprep.subr.bf16.mxu0 %v4160_v38  ;;  %3718 = vmatprep.subr.bf16.mxu1 %v4162_v60  ;;  %v3356_v48 = vmax.f32 %v3171_v53, 0.0  ;;  %v4159_v21 = vcombine.low %v5296_v24, %v5301_v62  ;;  %v2865_v53 = vrot.slane %v5320_v39, %v4825_v22  ;;  %v2873_v52 = vrot.slane %v5320_v39, %v4828_v23 }
0x193a   :  { %v3370_v49 = vmax.f32 %v3132_v7, 0.0  ;;  %v3372_v9 = vmax.f32 %v3175_v4, 0.0  ;;  %v3385_v58 = vpack.c.bf16 %v3369_v14, %v3353_v17  ;;  %v3387_v13 = vpack.c.bf16 %v3371_v5, %v3355_v59 }
0x193b   :  { %v3213_v18 = vpop.f32.mrf.mxu0  ;;  %v3256_v20 = vpop.f32.mrf.mxu1  ;;  %v3212_v24 = vadd.f32 %v3211_v6, %v2845_v45  ;;  %v3255_v62 = vadd.f32 %v3254_v11, %v2853_v50  ;;  %v2861_v4 = vrot.slane %v5320_v39, %v4719_v19  ;;  %v4163_v23 = vcombine.low %v5339_v42, %v5344_v46 }
0x193c   :  { %v3386_v56 = vpack.c.bf16 %v3370_v49, %v3354_v10  ;;  %v3388_v26 = vpack.c.bf16 %v3372_v9, %v3356_v48  ;;  %v3214_v33 = vadd.f32 %v3213_v18, %v2849_v28  ;;  %v3257_v63 = vadd.f32 %v3256_v20, %v2857_v1 }
0x193d   :  { %v3215_v34 = vpop.f32.mrf.mxu0  ;;  %v3258_v36 = vpop.f32.mrf.mxu1  ;;  %v3357_v44 = vmax.f32 %v3212_v24, 0.0  ;;  %v3359_v7 = vmax.f32 %v3255_v62, 0.0  ;;  %v4165_v11 = vcombine.low %v5349_v43, %v5354_v12 }
0x193e   :  { %v3216_v61 = vadd.f32 %v3215_v34, %v2845_v45  ;;  %v3259_v38 = vadd.f32 %v3258_v36, %v2853_v50  ;;  %3613 = vmatprep.mubr.bf16.mxu0 %v3386_v56  ;;  %3654 = vmatprep.mubr.bf16.mxu1 %v3388_v26  ;;  %v3358_v54 = vmax.f32 %v3214_v33, 0.0  ;;  %v3360_v55 = vmax.f32 %v3257_v63, 0.0  ;;  %v5381_v34 = vld [vmem:[%s5413_s1 + $0xb0] sm:$0xff] }
0x193f   :  { %v3217_v40 = vpop.f32.mrf.mxu0  ;;  %v3260_v25 = vpop.f32.mrf.mxu1  ;;  %3614 = vmatmul.mubr.bf16.vlgmr.msra.gmra.mxu0 %v3385_v58  ;;  %3655 = vmatmul.mubr.bf16.vlgmr.msra.gmra.mxu1 %v3387_v13  ;;  %v2869_v45 = vrot.slane %v5320_v39, %v4831_v35 }
0x1940   :  { %v3218_v32 = vadd.f32 %v3217_v40, %v2849_v28  ;;  %v3261_v41 = vadd.f32 %v3260_v25, %v2857_v1  ;;  %3678 = vmatpush1.bf16.xpose.msra.mxu0 %v4159_v21  ;;  %3719 = vmatpush1.bf16.xpose.msra.mxu1 %v4161_v29  ;;  %v3373_v47 = vmax.f32 %v3216_v61, 0.0  ;;  %v3375_v0 = vmax.f32 %v3259_v38, 0.0 }
0x1941   :  { %v3297_v51 = vpop.f32.mrf.mxu0  ;;  %v3340_v60 = vpop.f32.mrf.mxu1  ;;  %3759 = vmatprep.subr.bf16.mxu0 %v4164_v30  ;;  %3800 = vmatprep.subr.bf16.mxu1 %v4166_v37  ;;  %v3418_v38 = vrot.slane %v5381_v34, %v4571_v8 }
0x1942   :  { %v3374_v57 = vmax.f32 %v3218_v32, 0.0  ;;  %v3376_v2 = vmax.f32 %v3261_v41, 0.0  ;;  %v3389_v28 = vpack.c.bf16 %v3373_v47, %v3357_v44  ;;  %v3391_v1 = vpack.c.bf16 %v3375_v0, %v3359_v7 }
0x1943   :  { %v3299_v14 = vpop.f32.mrf.mxu0  ;;  %v3342_v5 = vpop.f32.mrf.mxu1  ;;  %v3298_v35 = vadd.f32 %v3297_v51, %v2861_v4  ;;  %v3341_v39 = vadd.f32 %v3340_v60, %v2869_v45 }
0x1944   :  { %v3390_v22 = vpack.c.bf16 %v3374_v57, %v3358_v54  ;;  %v3392_v6 = vpack.c.bf16 %v3376_v2, %v3360_v55  ;;  %v3300_v10 = vadd.f32 %v3299_v14, %v2865_v53  ;;  %v3343_v9 = vadd.f32 %v3342_v5, %v2873_v52 }
0x1945   :  { %v3301_v48 = vpop.f32.mrf.mxu0  ;;  %v3344_v49 = vpop.f32.mrf.mxu1  ;;  %v3361_v26 = vmax.f32 %v3298_v35, 0.0  ;;  %v3363_v29 = vmax.f32 %v3341_v39, 0.0 }
0x1946   :  { %v3302_v19 = vadd.f32 %v3301_v48, %v2861_v4  ;;  %v3345_v17 = vadd.f32 %v3344_v49, %v2869_v45  ;;  %3695 = vmatprep.mubr.bf16.mxu0 %v3390_v22  ;;  %3736 = vmatprep.mubr.bf16.mxu1 %v3392_v6  ;;  %v3362_v18 = vmax.f32 %v3300_v10, 0.0  ;;  %v3364_v20 = vmax.f32 %v3343_v9, 0.0 }
0x1947   :  { %v3303_v59 = vpop.f32.mrf.mxu0  ;;  %v3346_v50 = vpop.f32.mrf.mxu1  ;;  %3696 = vmatmul.mubr.bf16.vlgmr.msra.gmra.mxu0 %v3389_v28  ;;  %3737 = vmatmul.mubr.bf16.vlgmr.msra.gmra.mxu1 %v3391_v1 }
0x1948   :  { %v3304_v42 = vadd.f32 %v3303_v59, %v2865_v53  ;;  %v3347_v46 = vadd.f32 %v3346_v50, %v2873_v52  ;;  %3760 = vmatpush1.bf16.xpose.msra.mxu0 %v4163_v23  ;;  %3801 = vmatpush1.bf16.xpose.msra.mxu1 %v4165_v11  ;;  %v3377_v43 = vmax.f32 %v3302_v19, 0.0  ;;  %v3379_v12 = vmax.f32 %v3345_v17, 0.0 }
0x194a   :  { %v3378_v21 = vmax.f32 %v3304_v42, 0.0  ;;  %v3380_v56 = vmax.f32 %v3347_v46, 0.0  ;;  %v3393_v13 = vpack.c.bf16 %v3377_v43, %v3361_v26  ;;  %v3395_v33 = vpack.c.bf16 %v3379_v12, %v3363_v29 }
0x194c   :  { %v3394_v30 = vpack.c.bf16 %v3378_v21, %v3362_v18  ;;  %v3396_v58 = vpack.c.bf16 %v3380_v56, %v3364_v20 }
0x194e   :  { %3777 = vmatprep.mubr.bf16.mxu0 %v3394_v30  ;;  %3818 = vmatprep.mubr.bf16.mxu1 %v3396_v58 }
0x194f   :  { %3778 = vmatmul.mubr.bf16.vlgmr.msra.gmra.mxu0 %v3393_v13  ;;  %3819 = vmatmul.mubr.bf16.vlgmr.msra.gmra.mxu1 %v3395_v33 }
0x19f7   :  { %v3533_v36 = vpop.f32.mrf.mxu0  ;;  %v3574_v37 = vpop.f32.mrf.mxu1 }
0x19f8   :  { %v3534_v32 = vadd.f32 %v3533_v36, %v3418_v38 }
0x19f9   :  { %v3535_v63 = vpop.f32.mrf.mxu0  ;;  %v3576_v61 = vpop.f32.mrf.mxu1 }
0x19fa   :  { %v3575_v60 = vadd.f32 %v3574_v37, %v3534_v32 }
0x19fb   :  { %v3536_v24 = vpop.f32.mrf.mxu0  ;;  %v3577_v62 = vpop.f32.mrf.mxu1 }
0x19fc   :  { %v3537_v53 = vadd.f32 %v3536_v24, %v3418_v38  ;;  %v3867_v38 = vld [vmem:[%s5413_s1 + $0x90] sm:$0xff] }
0x19fd   :  { %v3538_v40 = vpop.f32.mrf.mxu0  ;;  %v3579_v25 = vpop.f32.mrf.mxu1 }
0x19fe   :  { %v3578_v44 = vadd.f32 %v3577_v62, %v3537_v53 }
0x19ff   :  { %v3615_v41 = vpop.f32.mrf.mxu0  ;;  %v3656_v47 = vpop.f32.mrf.mxu1 }
0x1a00   :  { %v3616_v55 = vadd.f32 %v3615_v41, %v3575_v60  ;;  %v3864_v60 = vrot.slane %v5381_v34, %v4671_v31 }
0x1a01   :  { %v3617_v0 = vpop.f32.mrf.mxu0  ;;  %v3658_v51 = vpop.f32.mrf.mxu1 }
0x1a02   :  { %v3657_v8 = vadd.f32 %v3656_v47, %v3616_v55  ;;  %v3858_v47 = vrot.slane %v5381_v34, %v4589_v15 }
0x1a03   :  { %v3618_v52 = vpop.f32.mrf.mxu0  ;;  %v3659_v54 = vpop.f32.mrf.mxu1 }
0x1a04   :  { %v3619_v45 = vadd.f32 %v3618_v52, %v3578_v44  ;;  %v3872_v44 = vrot.slane %v5381_v34, %v4714_v16 }
0x1a05   :  { %v3620_v57 = vpop.f32.mrf.mxu0  ;;  %v3661_v2 = vpop.f32.mrf.mxu1 }
0x1a06   :  { %v3660_v11 = vadd.f32 %v3659_v54, %v3619_v45 }
0x1a07   :  { %v3697_v7 = vpop.f32.mrf.mxu0  ;;  %v3738_v4 = vpop.f32.mrf.mxu1 }
0x1a08   :  { %v3698_v22 = vadd.f32 %v3697_v7, %v3657_v8 }
0x1a09   :  { %v3699_v14 = vpop.f32.mrf.mxu0  ;;  %v3740_v5 = vpop.f32.mrf.mxu1 }
0x1a0a   :  { %v3739_v10 = vadd.f32 %v3738_v4, %v3698_v22 }
0x1a0b   :  { %v3700_v6 = vpop.f32.mrf.mxu0  ;;  %v3741_v23 = vpop.f32.mrf.mxu1 }
0x1a0c   :  { %v3701_v48 = vadd.f32 %v3700_v6, %v3660_v11 }
0x1a0d   :  { %v3702_v28 = vpop.f32.mrf.mxu0  ;;  %v3743_v1 = vpop.f32.mrf.mxu1 }
0x1a0e   :  { %v3742_v39 = vadd.f32 %v3741_v23, %v3701_v48 }
0x1a0f   :  { %v3779_v49 = vpop.f32.mrf.mxu0  ;;  %v3820_v9 = vpop.f32.mrf.mxu1 }
0x1a10   :  { %v3780_v19 = vadd.f32 %v3779_v49, %v3739_v10 }
0x1a11   :  { %v3781_v17 = vpop.f32.mrf.mxu0  ;;  %v3822_v35 = vpop.f32.mrf.mxu1 }
0x1a12   :  { %v3821_v59 = vadd.f32 %v3820_v9, %v3780_v19 }
0x1a13   :  { %v3782_v50 = vpop.f32.mrf.mxu0  ;;  %v3823_v42 = vpop.f32.mrf.mxu1 }
0x1a14   :  { %v3783_v46 = vadd.f32 %v3782_v50, %v3742_v39  ;;  %v3827_v43 = vadd.f32 %v3821_v59, %v5195_v3 }
0x1a15   :  { %v3784_v12 = vpop.f32.mrf.mxu0  ;;  %v3825_v18 = vpop.f32.mrf.mxu1 }
0x1a16   :  { %v3824_v20 = vadd.f32 %v3823_v42, %v3783_v46  ;;  %v3829_v21 = vsel %vm129_vm2, %v3827_v43, 0.0 }
0x1a17   :  { %3830 = vadd.xlane.f32.xlu0 %v3829_v21 }
0x1a18   :  { %v3828_v56 = vadd.f32 %v3824_v20, %v5193_v27  ;;  %v3868_v27 = vld [vmem:[%s5413_s1 + $0x98] sm:$0xf]  ;;  %s4509_s1 = smov [#allocation2]  }
0x1a19   :  { %4394 = vmatprep.subr.msk.mxu0 %vm136_vm1, %v3868_v27  ;;  %s3964_s20 = sshll.u32 %s4509_s1, 4  ;;  %s3965_s20 = int_to_ptr.vmem [resolvable:$true] %s3964_s20 }
0x1a1a   :  { %v3832_v26 = vsel %vm129_vm2, %v3828_v56, 0.0  ;;  %4395 = vmatpush3.msk.msra.mxu0 %vm136_vm1, %v3868_v27  ;;  %s4482_s22 = scalar_lea.vmem %s3965_s20, 256  ;;  %p4487_p1 = scmp.lt.s32.totalorder %s3965_s20, %s3965_s20 }
0x1a1b   :  { %3833 = vadd.xlane.f32.xlu1 %v3832_v26  ;;  %4396 = vmatprep.subr.mxu0 %v3867_v38  ;;  %p4483_p0 = scmp.ne.s32.totalorder %s3965_s20, %s4482_s22  ;;  %p4488_p2 = scmp.lt.s32.totalorder %s4482_s22, %s4482_s22 }
0x1a1c   :  { %4397 = vmatpush3.msra.mxu0 %v3867_v38 }
0x1a1d   :  { %p4489_p3 = por %p4488_p2, %p4487_p1 }
0x1a1f   :  { %p4490_p4 = pnand %p4489_p3, %p4483_p0 }
0x1aa0   :  { %v3831_v29 = vpop.xlane.xlu0 %3830 }
0x1aa1   :  { %v3835_v30 = vmul.f32 0.083333336, %v3831_v29 }
0x1aa3   :  { %v3837_v58 = vsub.f32 %v3827_v43, %v3835_v30 }
0x1aa4   :  { %v3834_v13 = vpop.xlane.xlu1 %3833 }
0x1aa5   :  { %v3836_v33 = vmul.f32 0.083333336, %v3834_v13  ;;  %v3839_v36 = vmul.f32 %v3837_v58, %v3837_v58 }
0x1aa7   :  { %v3838_v37 = vsub.f32 %v3828_v56, %v3836_v33  ;;  %v3841_v3 = vsel %vm129_vm2, %v3839_v36, 0.0 }
0x1aa8   :  { %3842 = vadd.xlane.f32.xlu0 %v3841_v3 }
0x1aa9   :  { %v3840_v63 = vmul.f32 %v3838_v37, %v3838_v37 }
0x1aab   :  { %v3844_v61 = vsel %vm129_vm2, %v3840_v63, 0.0 }
0x1aac   :  { %3845 = vadd.xlane.f32.xlu1 %v3844_v61 }
0x1b31   :  { %v3843_v24 = vpop.xlane.xlu0 %3842 }
0x1b32   :  { %v3847_v62 = vmul.f32 0.083333336, %v3843_v24 }
0x1b34   :  { %v3849_v40 = vadd.f32 1e-05, %v3847_v62 }
0x1b35   :  { %v3846_v25 = vpop.xlane.xlu1 %3845 }
0x1b36   :  { %4473 = vrsqrt.f32 %v3849_v40  ;;  %v3848_v32 = vmul.f32 0.083333336, %v3846_v25 }
0x1b38   :  { %v3850_v41 = vadd.f32 1e-05, %v3848_v32 }
0x1b3a   :  { %4475 = vrsqrt.f32 %v3850_v41 }
0x1b43   :  { %v4474_v0 = vpop.eup %4473 }
0x1b44   :  { %v3853_v51 = vmul.f32 %v4474_v0, %v3837_v58 }
0x1b46   :  { %v3859_v53 = vmul.f32 %v3858_v47, %v3853_v51 }
0x1b47   :  { %v4476_v52 = vpop.eup %4475 }
0x1b48   :  { %v3854_v54 = vmul.f32 %v4476_v52, %v3838_v37  ;;  %v3865_v55 = vadd.f32 %v3864_v60, %v3859_v53 }
0x1b4a   :  { %v3860_v57 = vmul.f32 %v3858_v47, %v3854_v54  ;;  %4398 = vmatprep.mubr.msk.f32.mxu0 %vm129_vm2, %v3865_v55 }
0x1b4c   :  { %v3866_v2 = vadd.f32 %v3864_v60, %v3860_v57 }
0x1b4e   :  { %4399 = vmatmul.mubr.msk.f32.vlgmr.msra.gmra.mxu0 %vm129_vm2, %v3866_v2 }
0x1c0e   :  { %v4400_v7 = vpop.f32.mrf.mxu0 }
0x1c0f   :  { %v3954_v15 = vadd.f32 %v4400_v7, %v3872_v44 }
0x1c10   :  { %v3948_v4 = vpop.f32.mrf.mxu0 }
0x1c11   :  { %3958 = vst.msk [vmem:[#allocation2 + $0x8] sm:$0xff] %vm35_vm0, %v3954_v15  ;;  %v3949_v31 = vadd.f32 %v3948_v4, %v3872_v44 }
0x1c13   :  { %3957 = vst.msk [vmem:[#allocation2] sm:$0xff] %vm35_vm0, %v3949_v31 }
0x1c14   :  { %4493 = shalt.err (!%p4490_p4)
}
0x1c15   :  { %s4510_s23 = smov 128   ;;  %s4511_s24 = smov 8  }
0x1c16   :  { %3970 = dma.vmem_to_hbm [thread:$0]  %s3965_s20, 256, %s5417_s5, [#allocation3], %s4510_s23, %s4510_s23, %s4511_s24  }
0x1c17   :  { %4502 = dma.done.wait [#allocation3], 256  }
0x1c18   :  { %4503 = vsyncadd [#allocation3], 4294967040 }
0x1c19   :  { %3974 = vsyncpa [#allocation3], 1 }

</bundles_post_ra>
